<compile_context>
chip_gen: v6e
topology: v6e:2x2x1
jax: 0.10.0
libtpu: 0.0.40
codegen_flags: <defaults>
</compile_context>

<pallas_src>
import numpy as np
import jax
import jax.numpy as jnp
from jax.experimental import pallas as pl
from jax.experimental.pallas import tpu as pltpu


# ---------------------------------------------------------------------------
# Kernels
# ---------------------------------------------------------------------------

def _node_kernel(x_ref, seg_ref, xres_ref,
                 wpre_ref, bpre_ref, gw_ref,
                 wq_ref, wk_ref, wv_ref,
                 e_ref, t_ref,
                 xq_ref, kv_ref, ksum_ref):
    i = pl.program_id(0)

    # pre: 1x1 conv (matmul + bias), then GroupNorm(affine=False, eps=1e-5).
    # gw_ref already carries the 1/H averaging factor.
    y = jnp.dot(x_ref[...], wpre_ref[...], preferred_element_type=jnp.float32)
    y = y + bpre_ref[...]
    mean = jnp.dot(y, gw_ref[...], preferred_element_type=jnp.float32)
    ex2 = jnp.dot(y * y, gw_ref[...], preferred_element_type=jnp.float32)
    var = ex2 - mean * mean
    yn = (y - mean) * jax.lax.rsqrt(var + 1e-5)

    # grouped 1x1 convs (block-diagonal dense weights, 1/sqrt(H) pre-folded);
    # exp for q/k runs on the EUP.
    xq = jnp.exp(jnp.dot(yn, wq_ref[...], preferred_element_type=jnp.float32))
    xk = jnp.exp(jnp.dot(yn, wk_ref[...], preferred_element_type=jnp.float32))
    xv = jnp.dot(yn, wv_ref[...], preferred_element_type=jnp.float32)
    xq_ref[...] = xq

    # per-node, per-head outer products xk ⊗ xv flattened to (TN, F*H):
    #   op[n, r*H*H + h*H + v] = xk[n, r*H+h] * xv[n, r*H+v]
    op = (jnp.dot(xk, e_ref[...], preferred_element_type=jnp.float32) *
          jnp.dot(xv, t_ref[...], preferred_element_type=jnp.float32))

    # segment (scatter) sums over nodes via one-hot matmul.
    seg = seg_ref[...]                                               # (B, TN)
    kv_c = jnp.dot(seg, op, preferred_element_type=jnp.float32)      # (B, F*H)
    ks_c = jnp.dot(seg, xk, preferred_element_type=jnp.float32)      # (B, F)

    # Output block index is constant across the grid => output blocks stay
    # resident in VMEM and act as the accumulators (no scratch needed).
    @pl.when(i == 0)
    def _():
        kv_ref[...] = xres_ref[...]          # new state starts from the residual
        ksum_ref[...] = jnp.zeros_like(ksum_ref)

    kv_ref[...] += kv_c
    ksum_ref[...] += ks_c


def _out_kernel(xq_ref, segt_ref, kv_ref, ksum_ref,
                e_ref, tt_ref, g_ref,
                wpost_ref, bpost_ref,
                o_ref):
    xq = xq_ref[...]                                                 # (TN, F)
    segt = segt_ref[...]                                             # (TN, B)
    # gather per-graph state back to nodes (one-hot matmul gather).
    kv_n = jnp.dot(segt, kv_ref[...], preferred_element_type=jnp.float32)    # (TN, F*H)
    ks_n = jnp.dot(segt, ksum_ref[...], preferred_element_type=jnp.float32)  # (TN, F)
    # per-head normalization: denom[n, r*H+h'] = sum_h xq[n, r*H+h] * ks_n[n, r*H+h]
    denom = jnp.dot(xq * ks_n, g_ref[...], preferred_element_type=jnp.float32)
    xqn = xq / denom
    # out[n, r*H+v] = sum_h xqn[n, r*H+h] * kv_n[n, r*H*H + h*H + v]
    prod = jnp.dot(xqn, e_ref[...], preferred_element_type=jnp.float32) * kv_n
    msg = jnp.dot(prod, tt_ref[...], preferred_element_type=jnp.float32)     # (TN, F)
    # post 1x1 conv; ScaleLayer gain exp(scale) already folded into wpost/bpost.
    post = jnp.dot(msg, wpost_ref[...], preferred_element_type=jnp.float32)
    o_ref[...] = post + bpost_ref[...]


# ---------------------------------------------------------------------------
# Host-side helpers (tiny, parameter-derived constants)
# ---------------------------------------------------------------------------

def _structure_matrices(num_heads, head_dim, num_grp):
    h = head_dim
    eye_h = np.eye(h, dtype=np.float32)
    ones_row = np.ones((1, h), dtype=np.float32)
    e0 = np.kron(eye_h, ones_row)            # e0[h', h'*H + v] = 1
    t0 = np.kron(ones_row, eye_h)            # t0[v,  h'*H + v] = 1
    eye_r = np.eye(num_heads, dtype=np.float32)
    e_mat = np.kron(eye_r, e0)               # (F, F*H)
    t_mat = np.kron(eye_r, t0)               # (F, F*H)
    g_mat = np.kron(eye_r, np.ones((h, h), dtype=np.float32))                  # (F, F)
    gw_mat = np.kron(np.eye(num_grp, dtype=np.float32),
                     np.ones((h, h), dtype=np.float32)) / float(h)             # (W, W), 1/H folded
    return e_mat, t_mat, g_mat, gw_mat


def _group_dense(w_grouped, num_grp):
    """Densify a grouped 1x1 Conv1d weight (out_ch, in_per_group) to block-diag."""
    out_ch, in_pg = w_grouped.shape
    out_pg = out_ch // num_grp
    w3 = w_grouped.reshape(num_grp, out_pg, in_pg)
    eye = jnp.eye(num_grp, dtype=w_grouped.dtype)
    dense = jnp.einsum("goi,gh->gohi", w3, eye).reshape(out_ch, num_grp * in_pg)
    return dense


# ---------------------------------------------------------------------------
# Forward wrapper
# ---------------------------------------------------------------------------

def att_message_forward(x, x_res, batch, batch_size, params, *,
                        width_head, width_scale, tile_n=512):
    f32 = jnp.float32
    n_nodes, width = x.shape
    h = width_head
    num_grp = width // h
    feat = width * width_scale            # F
    g2 = feat // h                        # number of heads
    fh = feat * h                         # F*H
    b = batch_size

    x = x.astype(f32)
    xres_flat = x_res.astype(f32).reshape(b, fh)

    # constant 0/1 structure matrices (GroupNorm averaging folded into Gw).
    e_np, t_np, g_np, gw_np = _structure_matrices(g2, h, num_grp)
    e_mat = jnp.asarray(e_np)
    t_mat = jnp.asarray(t_np)
    tt_mat = jnp.asarray(t_np.T)
    g_mat = jnp.asarray(g_np)
    gw_mat = jnp.asarray(gw_np)

    # weights: pre-transposed / densified so the kernels only do `x @ w`;
    # constant scalings folded in on the host (1/sqrt(H) into wq/wk,
    # exp(log_scale) gain into w_post/b_post).
    sq = 1.0 / np.sqrt(h)
    w_pre_t = params["w_pre"].astype(f32).T                          # (W, W)
    b_pre = params["b_pre"].astype(f32).reshape(1, width)
    wq_t = _group_dense(params["w_q"].astype(f32), num_grp).T * sq   # (W, F)
    wk_t = _group_dense(params["w_k"].astype(f32), num_grp).T * sq
    wv_t = _group_dense(params["w_v"].astype(f32), num_grp).T
    gain = jnp.exp(params["log_scale"].astype(f32))                  # (W,)
    w_post_t = params["w_post"].astype(f32).T * gain[None, :]        # (F, W)
    b_post = (params["b_post"].astype(f32) * gain).reshape(1, width)

    # one-hot segment matrices: scatter = seg @ ·  (B,N), gather = seg_t @ · (N,B)
    # TODO(synk): for very large graph batches the dense (B, N) one-hot scales
    # O(N*B); a sorted-segment / scalar-prefetch variant would replace it.
    seg_t = (batch[:, None] == jnp.arange(b, dtype=batch.dtype)[None, :]).astype(f32)
    seg = seg_t.T

    # node tiling: single full-N tile when small (no pad, no output slice),
    # otherwise 512-row tiles (8/128 aligned, large tile for HBM efficiency).
    if n_nodes <= tile_n:
        tn = n_nodes
        n_pad = n_nodes
    else:
        tn = tile_n
        n_pad = ((n_nodes + tn - 1) // tn) * tn
    pad = n_pad - n_nodes
    if pad:
        # padded nodes have all-zero one-hot rows -> no segment-sum contribution.
        x = jnp.pad(x, ((0, pad), (0, 0)))
        seg_t = jnp.pad(seg_t, ((0, pad), (0, 0)))
        seg = jnp.pad(seg, ((0, 0), (0, pad)))
    n_tiles = n_pad // tn

    xq, kv, ksum = pl.pallas_call(
        _node_kernel,
        out_shape=(
            jax.ShapeDtypeStruct((n_pad, feat), f32),
            jax.ShapeDtypeStruct((b, fh), f32),
            jax.ShapeDtypeStruct((b, feat), f32),
        ),
        grid_spec=pltpu.PrefetchScalarGridSpec(
            num_scalar_prefetch=0,
            grid=(n_tiles,),
            in_specs=[
                pl.BlockSpec((tn, width), lambda i: (i, 0)),    # x
                pl.BlockSpec((b, tn), lambda i: (0, i)),        # seg (B, N)
                pl.BlockSpec((b, fh), lambda i: (0, 0)),        # x_res (flat)
                pl.BlockSpec((width, width), lambda i: (0, 0)),  # w_pre^T
                pl.BlockSpec((1, width), lambda i: (0, 0)),      # b_pre
                pl.BlockSpec((width, width), lambda i: (0, 0)),  # Gw (groupnorm mean)
                pl.BlockSpec((width, feat), lambda i: (0, 0)),   # wq^T (block-diag)
                pl.BlockSpec((width, feat), lambda i: (0, 0)),   # wk^T
                pl.BlockSpec((width, feat), lambda i: (0, 0)),   # wv^T
                pl.BlockSpec((feat, fh), lambda i: (0, 0)),      # E
                pl.BlockSpec((feat, fh), lambda i: (0, 0)),      # T
            ],
            out_specs=[
                pl.BlockSpec((tn, feat), lambda i: (i, 0)),      # xq
                pl.BlockSpec((b, fh), lambda i: (0, 0)),         # KV state (accumulator)
                pl.BlockSpec((b, feat), lambda i: (0, 0)),       # xk segment sum (accumulator)
            ],
        ),
        compiler_params=pltpu.CompilerParams(
            dimension_semantics=("arbitrary",),   # segment reduction across node tiles
        ),
    )(x, seg, xres_flat, w_pre_t, b_pre, gw_mat, wq_t, wk_t, wv_t, e_mat, t_mat)

    out = pl.pallas_call(
        _out_kernel,
        out_shape=jax.ShapeDtypeStruct((n_pad, width), f32),
        grid_spec=pltpu.PrefetchScalarGridSpec(
            num_scalar_prefetch=0,
            grid=(n_tiles,),
            in_specs=[
                pl.BlockSpec((tn, feat), lambda i: (i, 0)),      # xq
                pl.BlockSpec((tn, b), lambda i: (i, 0)),         # seg^T (N, B)
                pl.BlockSpec((b, fh), lambda i: (0, 0)),         # KV state
                pl.BlockSpec((b, feat), lambda i: (0, 0)),       # xk segment sum
                pl.BlockSpec((feat, fh), lambda i: (0, 0)),      # E
                pl.BlockSpec((fh, feat), lambda i: (0, 0)),      # T^T
                pl.BlockSpec((feat, feat), lambda i: (0, 0)),    # Gmat
                pl.BlockSpec((feat, width), lambda i: (0, 0)),   # w_post^T (gain folded)
                pl.BlockSpec((1, width), lambda i: (0, 0)),      # b_post (gain folded)
            ],
            out_specs=pl.BlockSpec((tn, width), lambda i: (i, 0)),
        ),
        compiler_params=pltpu.CompilerParams(
            dimension_semantics=("parallel",),
        ),
    )(xq, seg_t, kv, ksum, e_mat, tt_mat, g_mat, w_post_t, b_post)

    if pad:
        out = out[:n_nodes]
    x_res_new = kv.reshape(b, g2, h, h)
    return out, x_res_new


# ---------------------------------------------------------------------------
# Pure-JAX reference mirroring the PyTorch forward
# ---------------------------------------------------------------------------

def att_message_reference(x, x_res, batch, batch_size, params, *,
                          width_head, width_scale):
    f32 = jnp.float32
    x = x.astype(f32)
    n_nodes, width = x.shape
    h = width_head
    num_grp = width // h
    feat = width * width_scale

    y = x @ params["w_pre"].astype(f32).T + params["b_pre"].astype(f32)
    yg = y.reshape(n_nodes, num_grp, h)
    mean = yg.mean(axis=-1, keepdims=True)
    var = yg.var(axis=-1, keepdims=True)
    yn = ((yg - mean) / jnp.sqrt(var + 1e-5)).reshape(n_nodes, width)

    def gconv(z, wg):
        out_pg = wg.shape[0] // num_grp
        zg = z.reshape(n_nodes, num_grp, h)
        wgg = wg.reshape(num_grp, out_pg, h)
        return jnp.einsum("ngh,goh->ngo", zg, wgg).reshape(n_nodes, num_grp * out_pg)

    sq = 1.0 / np.sqrt(h)
    xq = jnp.exp(gconv(yn, params["w_q"].astype(f32)) * sq).reshape(n_nodes, -1, h)
    xk = jnp.exp(gconv(yn, params["w_k"].astype(f32)) * sq).reshape(n_nodes, -1, h)
    xv = gconv(yn, params["w_v"].astype(f32)).reshape(n_nodes, -1, h)

    seg = (batch[:, None] == jnp.arange(batch_size, dtype=batch.dtype)[None, :]).astype(f32)
    kv = jnp.einsum("nrh,nrv->nrhv", xk, xv)
    kv_sum = jnp.einsum("nb,nrhv->brhv", seg, kv) + x_res.astype(f32)
    xk_sum = jnp.einsum("nb,nrh->brh", seg, xk)[batch]
    denom = jnp.einsum("nrh,nrh->nr", xq, xk_sum)
    xqn = xq / denom[:, :, None]
    msg = jnp.einsum("nrh,nrhv->nrv", xqn, kv_sum[batch]).reshape(n_nodes, feat)
    out = msg @ params["w_post"].astype(f32).T + params["b_post"].astype(f32)
    out = out * jnp.exp(params["log_scale"].astype(f32))
    return out, kv_sum


# ---------------------------------------------------------------------------
# Demo
# ---------------------------------------------------------------------------

if __name__ == "__main__":
    width = 32
    width_head = 8
    width_scale = 4
    num_grp = width // width_head
    feat = width * width_scale           # 128
    g2 = feat // width_head              # 16 heads
    n_nodes = 16                         # total nodes across the graph batch
    batch_size = 2

    key = jax.random.PRNGKey(0)
    keys = jax.random.split(key, 10)

    def u(k, shape, bound):
        return jax.random.uniform(k, shape, jnp.float32, minval=-bound, maxval=bound)

    params = {
        "w_pre": u(keys[0], (width, width), 1.0 / np.sqrt(width)),
        "b_pre": u(keys[1], (width,), 1.0 / np.sqrt(width)),
        "w_q": u(keys[2], (feat, width_head), 1.0 / np.sqrt(width_head)),
        "w_k": u(keys[3], (feat, width_head), 1.0 / np.sqrt(width_head)),
        "w_v": u(keys[4], (feat, width_head), 1.0 / np.sqrt(width_head)),
        "w_post": u(keys[5], (width, feat), 1.0 / np.sqrt(feat)),
        "b_post": u(keys[6], (width,), 1.0 / np.sqrt(feat)),
        "log_scale": jnp.full((width,), np.log(0.01), jnp.float32),  # ScaleLayer(scale_init=0.01)
    }

    x = jax.random.normal(keys[7], (n_nodes, width), jnp.float32)
    x_res = jax.random.normal(keys[8], (batch_size, g2, width_head, width_head),
                              jnp.float32) * 0.1
    batch = jnp.array([0] * 9 + [1] * 7, dtype=jnp.int32)   # node -> graph id

    out, x_res_new = att_message_forward(
        x, x_res, batch, batch_size, params,
        width_head=width_head, width_scale=width_scale)
    jax.block_until_ready((out, x_res_new))

    ref_out, ref_res = att_message_reference(
        x, x_res, batch, batch_size, params,
        width_head=width_head, width_scale=width_scale)

    assert out.shape == (n_nodes, width), out.shape
    assert x_res_new.shape == (batch_size, g2, width_head, width_head), x_res_new.shape
    assert jnp.allclose(out, ref_out, atol=1e-4, rtol=1e-3), \
        float(jnp.max(jnp.abs(out - ref_out)))
    assert jnp.allclose(x_res_new, ref_res, atol=1e-3, rtol=1e-3), \
        float(jnp.max(jnp.abs(x_res_new - ref_res)))

    print("KERNEL_OK")
</pallas_src>

<mosaic_0001>
module attributes {stable_mosaic.version = 11 : i64} {
  func.func @_node_kernel(%arg0: i32, %arg1: memref<16x32xf32, #tpu.memory_space<vmem>>, %arg2: memref<2x16xf32, #tpu.memory_space<vmem>>, %arg3: memref<2x1024xf32, #tpu.memory_space<vmem>>, %arg4: memref<32x32xf32, #tpu.memory_space<vmem>>, %arg5: memref<1x32xf32, #tpu.memory_space<vmem>>, %arg6: memref<32x32xf32, #tpu.memory_space<vmem>>, %arg7: memref<32x128xf32, #tpu.memory_space<vmem>>, %arg8: memref<32x128xf32, #tpu.memory_space<vmem>>, %arg9: memref<32x128xf32, #tpu.memory_space<vmem>>, %arg10: memref<128x1024xf32, #tpu.memory_space<vmem>>, %arg11: memref<128x1024xf32, #tpu.memory_space<vmem>>, %arg12: memref<16x128xf32, #tpu.memory_space<vmem>>, %arg13: memref<2x1024xf32, #tpu.memory_space<vmem>>, %arg14: memref<2x128xf32, #tpu.memory_space<vmem>>) attributes {dimension_semantics = [#tpu.dimension_semantics<arbitrary>], iteration_bounds = array<i64: 1>, scalar_prefetch = 0 : i64, scratch_operands = 0 : i64, tpu.core_type = #tpu.core_type<tc>, window_params = [{transform_indices = @transform_0, window_bounds = array<i64: 16, 32>}, {transform_indices = @transform_1, window_bounds = array<i64: 2, 16>}, {pipeline_mode = #tpu.pipeline_mode<synchronous>, transform_indices = @transform_2, window_bounds = array<i64: 2, 1024>}, {pipeline_mode = #tpu.pipeline_mode<synchronous>, transform_indices = @transform_3, window_bounds = array<i64: 32, 32>}, {pipeline_mode = #tpu.pipeline_mode<synchronous>, transform_indices = @transform_4, window_bounds = array<i64: 1, 32>}, {pipeline_mode = #tpu.pipeline_mode<synchronous>, transform_indices = @transform_5, window_bounds = array<i64: 32, 32>}, {pipeline_mode = #tpu.pipeline_mode<synchronous>, transform_indices = @transform_6, window_bounds = array<i64: 32, 128>}, {pipeline_mode = #tpu.pipeline_mode<synchronous>, transform_indices = @transform_7, window_bounds = array<i64: 32, 128>}, {pipeline_mode = #tpu.pipeline_mode<synchronous>, transform_indices = @transform_8, window_bounds = array<i64: 32, 128>}, {pipeline_mode = #tpu.pipeline_mode<synchronous>, transform_indices = @transform_9, window_bounds = array<i64: 128, 1024>}, {pipeline_mode = #tpu.pipeline_mode<synchronous>, transform_indices = @transform_10, window_bounds = array<i64: 128, 1024>}, {transform_indices = @transform_11, window_bounds = array<i64: 16, 128>}, {pipeline_mode = #tpu.pipeline_mode<synchronous>, transform_indices = @transform_12, window_bounds = array<i64: 2, 1024>}, {pipeline_mode = #tpu.pipeline_mode<synchronous>, transform_indices = @transform_13, window_bounds = array<i64: 2, 128>}]} {
    %c0 = arith.constant 0 : index
    %c0_0 = arith.constant 0 : index
    %0 = vector.load %arg1[%c0, %c0_0] : memref<16x32xf32, #tpu.memory_space<vmem>>, vector<16x32xf32>
    %c0_1 = arith.constant 0 : index
    %c0_2 = arith.constant 0 : index
    %1 = vector.load %arg4[%c0_1, %c0_2] : memref<32x32xf32, #tpu.memory_space<vmem>>, vector<32x32xf32>
    %cst = arith.constant dense<0.000000e+00> : vector<16x32xf32>
    %2 = tpu.matmul %0, %1, %cst {dimension_numbers = #tpu.dot_dimension_numbers<[1], [0], [0], [1], [0, 0, 1, 1], [], []>} : vector<16x32xf32>, vector<32x32xf32>, vector<16x32xf32> -> vector<16x32xf32>
    %c0_3 = arith.constant 0 : index
    %c0_4 = arith.constant 0 : index
    %3 = vector.load %arg5[%c0_3, %c0_4] : memref<1x32xf32, #tpu.memory_space<vmem>>, vector<1x32xf32>
    %4 = vector.broadcast %3 : vector<1x32xf32> to vector<16x32xf32>
    %5 = arith.addf %2, %4 : vector<16x32xf32>
    %c0_5 = arith.constant 0 : index
    %c0_6 = arith.constant 0 : index
    %6 = vector.load %arg6[%c0_5, %c0_6] : memref<32x32xf32, #tpu.memory_space<vmem>>, vector<32x32xf32>
    %cst_7 = arith.constant dense<0.000000e+00> : vector<16x32xf32>
    %7 = tpu.matmul %5, %6, %cst_7 {dimension_numbers = #tpu.dot_dimension_numbers<[1], [0], [0], [1], [0, 0, 1, 1], [], []>} : vector<16x32xf32>, vector<32x32xf32>, vector<16x32xf32> -> vector<16x32xf32>
    %8 = arith.mulf %5, %5 : vector<16x32xf32>
    %c0_8 = arith.constant 0 : index
    %c0_9 = arith.constant 0 : index
    %9 = vector.load %arg6[%c0_8, %c0_9] : memref<32x32xf32, #tpu.memory_space<vmem>>, vector<32x32xf32>
    %cst_10 = arith.constant dense<0.000000e+00> : vector<16x32xf32>
    %10 = tpu.matmul %8, %9, %cst_10 {dimension_numbers = #tpu.dot_dimension_numbers<[1], [0], [0], [1], [0, 0, 1, 1], [], []>} : vector<16x32xf32>, vector<32x32xf32>, vector<16x32xf32> -> vector<16x32xf32>
    %11 = arith.mulf %7, %7 : vector<16x32xf32>
    %12 = arith.subf %10, %11 : vector<16x32xf32>
    %13 = arith.subf %5, %7 : vector<16x32xf32>
    %cst_11 = arith.constant 9.99999974E-6 : f32
    %14 = vector.broadcast %cst_11 : f32 to vector<16x32xf32>
    %15 = arith.addf %12, %14 : vector<16x32xf32>
    %16 = math.rsqrt %15 : vector<16x32xf32>
    %17 = arith.mulf %13, %16 : vector<16x32xf32>
    %c0_12 = arith.constant 0 : index
    %c0_13 = arith.constant 0 : index
    %18 = vector.load %arg7[%c0_12, %c0_13] : memref<32x128xf32, #tpu.memory_space<vmem>>, vector<32x128xf32>
    %cst_14 = arith.constant dense<0.000000e+00> : vector<16x128xf32>
    %19 = tpu.matmul %17, %18, %cst_14 {dimension_numbers = #tpu.dot_dimension_numbers<[1], [0], [0], [1], [0, 0, 1, 1], [], []>} : vector<16x32xf32>, vector<32x128xf32>, vector<16x128xf32> -> vector<16x128xf32>
    %20 = math.exp %19 : vector<16x128xf32>
    %c0_15 = arith.constant 0 : index
    %c0_16 = arith.constant 0 : index
    %21 = vector.load %arg8[%c0_15, %c0_16] : memref<32x128xf32, #tpu.memory_space<vmem>>, vector<32x128xf32>
    %cst_17 = arith.constant dense<0.000000e+00> : vector<16x128xf32>
    %22 = tpu.matmul %17, %21, %cst_17 {dimension_numbers = #tpu.dot_dimension_numbers<[1], [0], [0], [1], [0, 0, 1, 1], [], []>} : vector<16x32xf32>, vector<32x128xf32>, vector<16x128xf32> -> vector<16x128xf32>
    %23 = math.exp %22 : vector<16x128xf32>
    %c0_18 = arith.constant 0 : index
    %c0_19 = arith.constant 0 : index
    %24 = vector.load %arg9[%c0_18, %c0_19] : memref<32x128xf32, #tpu.memory_space<vmem>>, vector<32x128xf32>
    %cst_20 = arith.constant dense<0.000000e+00> : vector<16x128xf32>
    %25 = tpu.matmul %17, %24, %cst_20 {dimension_numbers = #tpu.dot_dimension_numbers<[1], [0], [0], [1], [0, 0, 1, 1], [], []>} : vector<16x32xf32>, vector<32x128xf32>, vector<16x128xf32> -> vector<16x128xf32>
    %c0_21 = arith.constant 0 : index
    %c0_22 = arith.constant 0 : index
    %26 = vector.load %arg12[%c0_21, %c0_22] : memref<16x128xf32, #tpu.memory_space<vmem>>, vector<16x128xf32>
    tpu.vector_store %arg12[%c0_21, %c0_22], %20 {strides = array<i32>} : memref<16x128xf32, #tpu.memory_space<vmem>>, vector<16x128xf32>,
    %c0_23 = arith.constant 0 : index
    %c0_24 = arith.constant 0 : index
    %27 = vector.load %arg10[%c0_23, %c0_24] : memref<128x1024xf32, #tpu.memory_space<vmem>>, vector<128x1024xf32>
    %cst_25 = arith.constant dense<0.000000e+00> : vector<16x1024xf32>
    %28 = tpu.matmul %23, %27, %cst_25 {dimension_numbers = #tpu.dot_dimension_numbers<[1], [0], [0], [1], [0, 0, 1, 1], [], []>} : vector<16x128xf32>, vector<128x1024xf32>, vector<16x1024xf32> -> vector<16x1024xf32>
    %c0_26 = arith.constant 0 : index
    %c0_27 = arith.constant 0 : index
    %29 = vector.load %arg11[%c0_26, %c0_27] : memref<128x1024xf32, #tpu.memory_space<vmem>>, vector<128x1024xf32>
    %cst_28 = arith.constant dense<0.000000e+00> : vector<16x1024xf32>
    %30 = tpu.matmul %25, %29, %cst_28 {dimension_numbers = #tpu.dot_dimension_numbers<[1], [0], [0], [1], [0, 0, 1, 1], [], []>} : vector<16x128xf32>, vector<128x1024xf32>, vector<16x1024xf32> -> vector<16x1024xf32>
    %31 = arith.mulf %28, %30 : vector<16x1024xf32>
    %c0_29 = arith.constant 0 : index
    %c0_30 = arith.constant 0 : index
    %32 = vector.load %arg2[%c0_29, %c0_30] : memref<2x16xf32, #tpu.memory_space<vmem>>, vector<2x16xf32>
    %cst_31 = arith.constant dense<0.000000e+00> : vector<2x1024xf32>
    %33 = tpu.matmul %32, %31, %cst_31 {dimension_numbers = #tpu.dot_dimension_numbers<[1], [0], [0], [1], [0, 0, 1, 1], [], []>} : vector<2x16xf32>, vector<16x1024xf32>, vector<2x1024xf32> -> vector<2x1024xf32>
    %cst_32 = arith.constant dense<0.000000e+00> : vector<2x128xf32>
    %34 = tpu.matmul %32, %23, %cst_32 {dimension_numbers = #tpu.dot_dimension_numbers<[1], [0], [0], [1], [0, 0, 1, 1], [], []>} : vector<2x16xf32>, vector<16x128xf32>, vector<2x128xf32> -> vector<2x128xf32>
    %c0_i32 = arith.constant 0 : i32
    %35 = arith.cmpi eq, %arg0, %c0_i32 : i32
    %36 = arith.extui %35 : i1 to i32
    %c0_i32_33 = arith.constant 0 : i32
    %37 = arith.cmpi ne, %36, %c0_i32_33 : i32
    scf.if %37 {
      %c0_42 = arith.constant 0 : index
      %c0_43 = arith.constant 0 : index
      %44 = vector.load %arg3[%c0_42, %c0_43] : memref<2x1024xf32, #tpu.memory_space<vmem>>, vector<2x1024xf32>
      %c0_44 = arith.constant 0 : index
      %c0_45 = arith.constant 0 : index
      %45 = vector.load %arg13[%c0_44, %c0_45] : memref<2x1024xf32, #tpu.memory_space<vmem>>, vector<2x1024xf32>
      tpu.vector_store %arg13[%c0_44, %c0_45], %44 {strides = array<i32>} : memref<2x1024xf32, #tpu.memory_space<vmem>>, vector<2x1024xf32>,
      %cst_46 = arith.constant 0.000000e+00 : f32
      %46 = vector.broadcast %cst_46 : f32 to vector<2x128xf32>
      %c0_47 = arith.constant 0 : index
      %c0_48 = arith.constant 0 : index
      %47 = vector.load %arg14[%c0_47, %c0_48] : memref<2x128xf32, #tpu.memory_space<vmem>>, vector<2x128xf32>
      tpu.vector_store %arg14[%c0_47, %c0_48], %46 {strides = array<i32>} : memref<2x128xf32, #tpu.memory_space<vmem>>, vector<2x128xf32>,
    } else {
    }
    %c0_34 = arith.constant 0 : index
    %c0_35 = arith.constant 0 : index
    %38 = vector.load %arg13[%c0_34, %c0_35] : memref<2x1024xf32, #tpu.memory_space<vmem>>, vector<2x1024xf32>
    %39 = arith.addf %38, %33 : vector<2x1024xf32>
    %c0_36 = arith.constant 0 : index
    %c0_37 = arith.constant 0 : index
    %40 = vector.load %arg13[%c0_36, %c0_37] : memref<2x1024xf32, #tpu.memory_space<vmem>>, vector<2x1024xf32>
    tpu.vector_store %arg13[%c0_36, %c0_37], %39 {strides = array<i32>} : memref<2x1024xf32, #tpu.memory_space<vmem>>, vector<2x1024xf32>,
    %c0_38 = arith.constant 0 : index
    %c0_39 = arith.constant 0 : index
    %41 = vector.load %arg14[%c0_38, %c0_39] : memref<2x128xf32, #tpu.memory_space<vmem>>, vector<2x128xf32>
    %42 = arith.addf %41, %34 : vector<2x128xf32>
    %c0_40 = arith.constant 0 : index
    %c0_41 = arith.constant 0 : index
    %43 = vector.load %arg14[%c0_40, %c0_41] : memref<2x128xf32, #tpu.memory_space<vmem>>, vector<2x128xf32>
    tpu.vector_store %arg14[%c0_40, %c0_41], %42 {strides = array<i32>} : memref<2x128xf32, #tpu.memory_space<vmem>>, vector<2x128xf32>,
    return
  }
  func.func @transform_0(%arg0: i32) -> (i32, i32) {
    %c0_i32 = arith.constant 0 : i32
    %c0_i32_0 = arith.constant 0 : i32
    return %arg0, %c0_i32 : i32, i32
  }
  func.func @transform_1(%arg0: i32) -> (i32, i32) {
    %c0_i32 = arith.constant 0 : i32
    %c0_i32_0 = arith.constant 0 : i32
    return %c0_i32, %arg0 : i32, i32
  }
  func.func @transform_2(%arg0: i32) -> (i32, i32) {
    %c0_i32 = arith.constant 0 : i32
    %c0_i32_0 = arith.constant 0 : i32
    %c0_i32_1 = arith.constant 0 : i32
    return %c0_i32, %c0_i32_0 : i32, i32
  }
  func.func @transform_3(%arg0: i32) -> (i32, i32) {
    %c0_i32 = arith.constant 0 : i32
    %c0_i32_0 = arith.constant 0 : i32
    %c0_i32_1 = arith.constant 0 : i32
    return %c0_i32, %c0_i32_0 : i32, i32
  }
  func.func @transform_4(%arg0: i32) -> (i32, i32) {
    %c0_i32 = arith.constant 0 : i32
    %c0_i32_0 = arith.constant 0 : i32
    %c0_i32_1 = arith.constant 0 : i32
    return %c0_i32, %c0_i32_0 : i32, i32
  }
  func.func @transform_5(%arg0: i32) -> (i32, i32) {
    %c0_i32 = arith.constant 0 : i32
    %c0_i32_0 = arith.constant 0 : i32
    %c0_i32_1 = arith.constant 0 : i32
    return %c0_i32, %c0_i32_0 : i32, i32
  }
  func.func @transform_6(%arg0: i32) -> (i32, i32) {
    %c0_i32 = arith.constant 0 : i32
    %c0_i32_0 = arith.constant 0 : i32
    %c0_i32_1 = arith.constant 0 : i32
    return %c0_i32, %c0_i32_0 : i32, i32
  }
  func.func @transform_7(%arg0: i32) -> (i32, i32) {
    %c0_i32 = arith.constant 0 : i32
    %c0_i32_0 = arith.constant 0 : i32
    %c0_i32_1 = arith.constant 0 : i32
    return %c0_i32, %c0_i32_0 : i32, i32
  }
  func.func @transform_8(%arg0: i32) -> (i32, i32) {
    %c0_i32 = arith.constant 0 : i32
    %c0_i32_0 = arith.constant 0 : i32
    %c0_i32_1 = arith.constant 0 : i32
    return %c0_i32, %c0_i32_0 : i32, i32
  }
  func.func @transform_9(%arg0: i32) -> (i32, i32) {
    %c0_i32 = arith.constant 0 : i32
    %c0_i32_0 = arith.constant 0 : i32
    %c0_i32_1 = arith.constant 0 : i32
    return %c0_i32, %c0_i32_0 : i32, i32
  }
  func.func @transform_10(%arg0: i32) -> (i32, i32) {
    %c0_i32 = arith.constant 0 : i32
    %c0_i32_0 = arith.constant 0 : i32
    %c0_i32_1 = arith.constant 0 : i32
    return %c0_i32, %c0_i32_0 : i32, i32
  }
  func.func @transform_11(%arg0: i32) -> (i32, i32) {
    %c0_i32 = arith.constant 0 : i32
    %c0_i32_0 = arith.constant 0 : i32
    return %arg0, %c0_i32 : i32, i32
  }
  func.func @transform_12(%arg0: i32) -> (i32, i32) {
    %c0_i32 = arith.constant 0 : i32
    %c0_i32_0 = arith.constant 0 : i32
    %c0_i32_1 = arith.constant 0 : i32
    return %c0_i32, %c0_i32_0 : i32, i32
  }
  func.func @transform_13(%arg0: i32) -> (i32, i32) {
    %c0_i32 = arith.constant 0 : i32
    %c0_i32_0 = arith.constant 0 : i32
    %c0_i32_1 = arith.constant 0 : i32
    return %c0_i32, %c0_i32_0 : i32, i32
  }
}

</mosaic_0001>

<bundles_post_ra>
// kernel: tpu_custom_call.1
= control target key start
LH: loop header
LB: loop body
LE: loop exit
PB: predicated region body
PF: predicated region fallthrough
CT: control target
= control target key end

     0   :  { %19 = vsyncpa [#allocation3], 0  ;;  %s2719_s0 = inlined_call_operand.hbm [shape: f32[16,32], index: 0, kind: input, shape index: {}]   ;;  %s2720_s1 = inlined_call_operand.hbm [shape: f32[2,16], index: 1, kind: input, shape index: {}]   ;;  %s2721_s2 = inlined_call_operand.hbm [shape: f32[2,1024], index: 2, kind: input, shape index: {}]   ;;  %s2722_s3 = inlined_call_operand.hbm [shape: f32[32,32], index: 3, kind: input, shape index: {}]   ;;  %s2723_s4 = inlined_call_operand.vmem [shape: f32[1,32], index: 4, kind: input, shape index: {}]   ;;  %s2724_s5 = inlined_call_operand.hbm [shape: f32[32,32], index: 5, kind: input, shape index: {}]   ;;  %s2725_s6 = inlined_call_operand.hbm [shape: f32[32,128], index: 6, kind: input, shape index: {}]   ;;  %s2726_s7 = inlined_call_operand.hbm [shape: f32[32,128], index: 7, kind: input, shape index: {}]   ;;  %s2727_s8 = inlined_call_operand.hbm [shape: f32[32,128], index: 8, kind: input, shape index: {}]   ;;  %s2728_s9 = inlined_call_operand.hbm [shape: f32[128,1024], index: 9, kind: input, shape index: {}]   ;;  %s2729_s10 = inlined_call_operand.hbm [shape: f32[128,1024], index: 10, kind: input, shape index: {}]   ;;  %s2730_s11 = inlined_call_operand.hbm [shape: f32[16,128], index: 11, kind: output, shape index: {0}]   ;;  %s2731_s12 = inlined_call_operand.hbm [shape: f32[2,1024], index: 12, kind: output, shape index: {1}]   ;;  %s2732_s13 = inlined_call_operand.hbm [shape: f32[2,128], index: 13, kind: output, shape index: {2}]  }
   0x1   :  { %20 = vsyncpa [#allocation6], 0 }
   0x2   :  { %21 = vsyncpa [#allocation9], 0 }
   0x3   :  { %22 = vsyncpa [#allocation12], 0 }
   0x4   :  { %23 = vsyncpa [#allocation15], 0 }
   0x5   :  { %24 = vsyncpa [#allocation18], 0 }
   0x6   :  { %25 = vsyncpa [#allocation4], 0 }
   0x7   :  { %26 = vsyncpa [#allocation21], 0  ;;  %s2499_s25 = smov [#allocation5]  }
   0x8   :  { %s45_s26 = sshll.u32 %s2499_s25, 4  ;;  %s46_s26 = int_to_ptr.vmem [resolvable:$true] %s45_s26 }
   0x9   :  { %s2231_s27 = scalar_lea.vmem %s46_s26, 32  ;;  %p2236_p1 = scmp.lt.s32.totalorder %s46_s26, %s46_s26 }
   0xa   :  { %p2232_p0 = scmp.ne.s32.totalorder %s46_s26, %s2231_s27  ;;  %p2237_p2 = scmp.lt.s32.totalorder %s2231_s27, %s2231_s27 }
   0xc   :  { %p2238_p3 = por %p2237_p2, %p2236_p1 }
   0xe   :  { %p2239_p4 = pnand %p2238_p3, %p2232_p0 }
  0x10   :  { %2242 = shalt.err (!%p2239_p4)
}
  0x11   :  { %48 = dma.hbm_to_vmem [thread:$0]  %s2720_s1, 32, %s46_s26, [#allocation6]  }
  0x12   :  { %s2500_s30 = smov [#allocation8]   ;;  %s2501_s15 = smov [#allocation11]  }
  0x13   :  { %s64_s14 = sshll.u32 %s2500_s30, 4  ;;  %s90_s16 = sshll.u32 %s2501_s15, 4  ;;  %s65_s14 = int_to_ptr.vmem [resolvable:$true] %s64_s14  ;;  %s91_s16 = int_to_ptr.vmem [resolvable:$true] %s90_s16 }
  0x14   :  { %s2251_s17 = scalar_lea.vmem %s65_s14, 512  ;;  %p2256_p6 = scmp.lt.s32.totalorder %s65_s14, %s65_s14 }
  0x15   :  { %p2252_p5 = scmp.ne.s32.totalorder %s65_s14, %s2251_s17  ;;  %p2257_p7 = scmp.lt.s32.totalorder %s2251_s17, %s2251_s17 }
  0x17   :  { %p2258_p8 = por %p2257_p7, %p2256_p6 }
  0x19   :  { %p2259_p9 = pnand %p2258_p8, %p2252_p5 }
  0x1b   :  { %2262 = shalt.err (!%p2259_p9)
}
  0x1c   :  { %s2502_s18 = smov 128   ;;  %s2503_s19 = smov 8  }
  0x1d   :  { %70 = dma.hbm_to_vmem [thread:$0]  %s2722_s3, 512, %s65_s14, [#allocation9], %s2502_s18, %s2502_s18, %s2503_s19  }
  0x1e   :  { %s2271_s1 = scalar_lea.vmem %s91_s16, 512  ;;  %p2276_p11 = scmp.lt.s32.totalorder %s91_s16, %s91_s16 }
  0x1f   :  { %p2272_p10 = scmp.ne.s32.totalorder %s91_s16, %s2271_s1  ;;  %p2277_p12 = scmp.lt.s32.totalorder %s2271_s1, %s2271_s1 }
  0x21   :  { %p2278_p13 = por %p2277_p12, %p2276_p11 }
  0x23   :  { %p2279_p0 = pnand %p2278_p13, %p2272_p10 }
  0x25   :  { %2282 = shalt.err (!%p2279_p0)
}
  0x26   :  { %96 = dma.hbm_to_vmem [thread:$0]  %s2725_s6, 512, %s91_s16, [#allocation12], %s2502_s18, %s2502_s18, %s2503_s19  }
  0x27   :  { %s2504_s24 = smov [#allocation14]   ;;  %s2505_s26 = smov [#allocation2]  }
  0x28   :  { %s114_s25 = sshll.u32 %s2504_s24, 4  ;;  %s32_s3 = sshll.u32 %s2505_s26, 4  ;;  %s115_s25 = int_to_ptr.vmem [resolvable:$true] %s114_s25  ;;  %s33_s3 = int_to_ptr.vmem [resolvable:$true] %s32_s3 }
  0x29   :  { %s2291_s27 = scalar_lea.vmem %s115_s25, 512  ;;  %p2296_p2 = scmp.lt.s32.totalorder %s115_s25, %s115_s25 }
  0x2a   :  { %p2292_p1 = scmp.ne.s32.totalorder %s115_s25, %s2291_s27  ;;  %p2297_p3 = scmp.lt.s32.totalorder %s2291_s27, %s2291_s27 }
  0x2c   :  { %p2298_p4 = por %p2297_p3, %p2296_p2 }
  0x2e   :  { %p2299_p5 = pnand %p2298_p4, %p2292_p1 }
  0x30   :  { %2302 = shalt.err (!%p2299_p5)
}
  0x31   :  { %120 = dma.hbm_to_vmem [thread:$0]  %s2727_s8, 512, %s115_s25, [#allocation15], %s2502_s18, %s2502_s18, %s2503_s19  }
  0x32   :  { %s2311_s6 = scalar_lea.vmem %s33_s3, 256  ;;  %p2316_p7 = scmp.lt.s32.totalorder %s33_s3, %s33_s3 }
  0x33   :  { %p2312_p6 = scmp.ne.s32.totalorder %s33_s3, %s2311_s6  ;;  %p2317_p8 = scmp.lt.s32.totalorder %s2311_s6, %s2311_s6 }
  0x35   :  { %p2318_p9 = por %p2317_p8, %p2316_p7 }
  0x37   :  { %p2319_p10 = pnand %p2318_p9, %p2312_p6 }
  0x39   :  { %2322 = shalt.err (!%p2319_p10)
}
  0x3a   :  { %38 = dma.hbm_to_vmem [thread:$0]  %s2719_s0, 256, %s33_s3, [#allocation3], %s2502_s18, %s2502_s18, %s2503_s19  }
  0x3b   :  { %s2506_s15 = smov [#allocation7]   ;;  %s2507_s17 = smov [#allocation10]  }
  0x3c   :  { %s55_s16 = sshll.u32 %s2506_s15, 4  ;;  %s78_s8 = sshll.u32 %s2507_s17, 4  ;;  %s56_s16 = int_to_ptr.vmem [resolvable:$true] %s55_s16  ;;  %s79_s8 = int_to_ptr.vmem [resolvable:$true] %s78_s8 }
  0x3d   :  { %s2331_s20 = scalar_lea.vmem %s56_s16, 256  ;;  %p2336_p12 = scmp.lt.s32.totalorder %s56_s16, %s56_s16 }
  0x3e   :  { %p2332_p11 = scmp.ne.s32.totalorder %s56_s16, %s2331_s20  ;;  %p2337_p13 = scmp.lt.s32.totalorder %s2331_s20, %s2331_s20 }
  0x40   :  { %p2338_p0 = por %p2337_p13, %p2336_p12 }
  0x42   :  { %p2339_p1 = pnand %p2338_p0, %p2332_p11 }
  0x44   :  { %2342 = shalt.err (!%p2339_p1)
}
  0x45   :  { %58 = dma.hbm_to_vmem [thread:$0]  %s2721_s2, 256, %s56_s16, [#allocation6]  }
  0x46   :  { %s2351_s22 = scalar_lea.vmem %s79_s8, 512  ;;  %p2356_p3 = scmp.lt.s32.totalorder %s79_s8, %s79_s8 }
  0x47   :  { %p2352_p2 = scmp.ne.s32.totalorder %s79_s8, %s2351_s22  ;;  %p2357_p4 = scmp.lt.s32.totalorder %s2351_s22, %s2351_s22 }
  0x49   :  { %p2358_p5 = por %p2357_p4, %p2356_p3 }
  0x4b   :  { %p2359_p6 = pnand %p2358_p5, %p2352_p2 }
  0x4d   :  { %2362 = shalt.err (!%p2359_p6)
}
  0x4e   :  { %84 = dma.hbm_to_vmem [thread:$0]  %s2724_s5, 512, %s79_s8, [#allocation9], %s2502_s18, %s2502_s18, %s2503_s19  }
  0x4f   :  { %s2508_s24 = smov [#allocation13]   ;;  %s2509_s26 = smov [#allocation16]  }
  0x50   :  { %s102_s25 = sshll.u32 %s2508_s24, 4  ;;  %s126_s2 = sshll.u32 %s2509_s26, 4  ;;  %s103_s25 = int_to_ptr.vmem [resolvable:$true] %s102_s25  ;;  %s127_s2 = int_to_ptr.vmem [resolvable:$true] %s126_s2 }
  0x51   :  { %s2371_s3 = scalar_lea.vmem %s103_s25, 512  ;;  %p2376_p8 = scmp.lt.s32.totalorder %s103_s25, %s103_s25 }
  0x52   :  { %p2372_p7 = scmp.ne.s32.totalorder %s103_s25, %s2371_s3  ;;  %p2377_p9 = scmp.lt.s32.totalorder %s2371_s3, %s2371_s3 }
  0x54   :  { %p2378_p10 = por %p2377_p9, %p2376_p8 }
  0x56   :  { %p2379_p11 = pnand %p2378_p10, %p2372_p7 }
  0x58   :  { %2382 = shalt.err (!%p2379_p11)
}
  0x59   :  { %108 = dma.hbm_to_vmem [thread:$0]  %s2726_s7, 512, %s103_s25, [#allocation12], %s2502_s18, %s2502_s18, %s2503_s19  }
  0x5a   :  { %s2391_s5 = scalar_lea.vmem %s127_s2, 16384  ;;  %p2396_p13 = scmp.lt.s32.totalorder %s127_s2, %s127_s2 }
  0x5b   :  { %p2392_p12 = scmp.ne.s32.totalorder %s127_s2, %s2391_s5  ;;  %p2397_p0 = scmp.lt.s32.totalorder %s2391_s5, %s2391_s5 }
  0x5d   :  { %p2398_p1 = por %p2397_p0, %p2396_p13 }
  0x5f   :  { %p2399_p2 = pnand %p2398_p1, %p2392_p12 }
  0x61   :  { %2402 = shalt.err (!%p2399_p2)
}
  0x62   :  { %s2510_s29 = smov 1024   ;;  %s2511_s6 = smov 64  }
  0x63   :  { %132 = dma.hbm_to_vmem [thread:$0]  %s2728_s9, 16384, %s127_s2, [#allocation15], %s2510_s29, %s2510_s29, %s2511_s6  }
  0x64   :  { %s2512_s15 = smov [#allocation17]  }
  0x65   :  { %s138_s16 = sshll.u32 %s2512_s15, 4  ;;  %s139_s16 = int_to_ptr.vmem [resolvable:$true] %s138_s16 }
  0x66   :  { %s2411_s17 = scalar_lea.vmem %s139_s16, 16384  ;;  %p2416_p4 = scmp.lt.s32.totalorder %s139_s16, %s139_s16 }
  0x67   :  { %p2412_p3 = scmp.ne.s32.totalorder %s139_s16, %s2411_s17  ;;  %p2417_p5 = scmp.lt.s32.totalorder %s2411_s17, %s2411_s17 }
  0x69   :  { %p2418_p6 = por %p2417_p5, %p2416_p4 }
  0x6b   :  { %p2419_p7 = pnand %p2418_p6, %p2412_p3 }
  0x6d   :  { %2422 = shalt.err (!%p2419_p7)
}
  0x6e   :  { %144 = dma.hbm_to_vmem [thread:$0]  %s2729_s10, 16384, %s139_s16, [#allocation18], %s2510_s29, %s2510_s29, %s2511_s6  }
  0x6f   :  { %2483 = dma.done.wait [#allocation3], 256  }
  0x70   :  { %2484 = vsyncadd [#allocation3], 4294967040 }
  0x71   :  { %2485 = dma.done.wait [#allocation6], 288  }
  0x72   :  { %2486 = vsyncadd [#allocation6], 4294967008 }
  0x73   :  { %2487 = dma.done.wait [#allocation9], 1024  }
  0x74   :  { %2488 = vsyncadd [#allocation9], 4294966272 }
  0x75   :  { %2489 = dma.done.wait [#allocation12], 1024  }
  0x76   :  { %2490 = vsyncadd [#allocation12], 4294966272 }
  0x77   :  { %2491 = dma.done.wait [#allocation15], 16896  }
  0x78   :  { %2492 = vsyncadd [#allocation15], 4294950400 }
  0x79   :  { %2493 = dma.done.wait [#allocation18], 16384  }
  0x7a   :  { %2494 = vsyncadd [#allocation18], 4294950912  ;;  %vm188_vm0 = vcmask 261120   ;;  %v180_v0 = vld [vmem:[#allocation8 + $0x18] sm:$0xff]  ;;  %v179_v1 = vld [vmem:[#allocation8 + $0x10] sm:$0xff]  ;;  %vm1592_vm1 = vcmask 130048  }
  0x7b   :  { %2118 = vmatprep.subr.mxu0 %v180_v0  ;;  %v175_v2 = vld [vmem:[#allocation2] sm:$0xff]  ;;  %v178_v3 = vld [vmem:[#allocation8 + $0x8] sm:$0xff]  ;;  %v272_v7 = vld [vmem:[#allocation10 + $0x10] sm:$0xff]  ;;  %vm2514_vm2 = vmmov 0  }
  0x7c   :  { %2119 = vmatpush3.msra.mxu0 %v180_v0  ;;  %2126 = vmatprep.mubr.msk.f32.mxu0 %vm188_vm0, %v175_v2  ;;  %v273_v4 = vld [vmem:[#allocation10 + $0x18] sm:$0xff]  ;;  %v177_v5 = vld [vmem:[#allocation8] sm:$0xff]  ;;  %v271_v8 = vld [vmem:[#allocation10 + $0x8] sm:$0xff] }
  0x7d   :  { %2120 = vmatprep.subr.mxu0 %v179_v1  ;;  %2129 = vmatprep.subr.mxu1 %v273_v4  ;;  %v176_v6 = vld [vmem:[#allocation2 + $0x8] sm:$0xff]  ;;  %v2061_v10 = vld [vmem:[%s2723_s4] ss:$0 sm:$0xff]  ;;  %v452_v19 = vld [vmem:[#allocation11 + $0x10] sm:$0xff]  ;;  %s2515_s4 = smov [#allocation19]  }
  0x7e   :  { %2121 = vmatpush3.msra.mxu0 %v179_v1  ;;  %2130 = vmatpush3.msra.mxu1 %v273_v4  ;;  %v270_v9 = vld [vmem:[#allocation10] sm:$0xff]  ;;  %v453_v17 = vld [vmem:[#allocation11 + $0x18] sm:$0xff]  ;;  %v541_v20 = vld [vmem:[#allocation13 + $0x10] sm:$0xff]  ;;  %s2017_s20 = sshll.u32 %s2515_s4, 4  ;;  %s2018_s20 = int_to_ptr.vmem [resolvable:$true] %s2017_s20 }
  0x7f   :  { %2122 = vmatprep.subr.mxu0 %v178_v3  ;;  %2131 = vmatprep.subr.mxu1 %v272_v7  ;;  %v542_v18 = vld [vmem:[#allocation13 + $0x18] sm:$0xff]  ;;  %v451_v21 = vld [vmem:[#allocation11 + $0x8] sm:$0xff]  ;;  %v450_v23 = vld [vmem:[#allocation11] sm:$0xff]  ;;  %s2423_s21 = scalar_lea.vmem %s2018_s20, 256  ;;  %p2428_p9 = scmp.lt.s32.totalorder %s2018_s20, %s2018_s20 }
  0x80   :  { %2123 = vmatpush3.msra.mxu0 %v178_v3  ;;  %2132 = vmatpush3.msra.mxu1 %v272_v7  ;;  %v540_v22 = vld [vmem:[#allocation13 + $0x8] sm:$0xff]  ;;  %v539_v24 = vld [vmem:[#allocation13] sm:$0xff]  ;;  %v625_v25 = vld [vmem:[#allocation14 + $0x18] sm:$0xff]  ;;  %p2424_p8 = scmp.ne.s32.totalorder %s2018_s20, %s2423_s21  ;;  %p2429_p10 = scmp.lt.s32.totalorder %s2423_s21, %s2423_s21 }
  0x81   :  { %2124 = vmatprep.subr.mxu0 %v177_v5  ;;  %2133 = vmatprep.subr.mxu1 %v271_v8  ;;  %v824_v26 = vld [vmem:[#allocation16 + $0x3c8] sm:$0xff]  ;;  %v624_v43 = vld [vmem:[#allocation14 + $0x10] sm:$0xff]  ;;  %v823_v44 = vld [vmem:[#allocation16 + $0x3c0] sm:$0xff] }
  0x82   :  { %2125 = vmatpush3.msra.mxu0 %v177_v5  ;;  %2134 = vmatpush3.msra.mxu1 %v271_v8  ;;  %v816_v45 = vld [vmem:[#allocation16 + $0x388] sm:$0xff]  ;;  %v815_v47 = vld [vmem:[#allocation16 + $0x380] sm:$0xff]  ;;  %v826_v52 = vld [vmem:[#allocation16 + $0x3d8] sm:$0xff]  ;;  %p2430_p11 = por %p2429_p10, %p2428_p9 }
  0x83   :  { %2127 = vmatmul.mubr.msk.f32.vlgmr.msra.gmra.mxu0 %vm188_vm0, %v176_v6  ;;  %2140 = vmatprep.subr.mxu0 %v273_v4  ;;  %v623_v46 = vld [vmem:[#allocation14 + $0x8] sm:$0xff]  ;;  %v622_v49 = vld [vmem:[#allocation14] sm:$0xff]  ;;  %v825_v53 = vld [vmem:[#allocation16 + $0x3d0] sm:$0xff] }
  0x84   :  { %2141 = vmatpush3.msra.mxu0 %v273_v4  ;;  %2135 = vmatprep.subr.mxu1 %v270_v9  ;;  %v808_v48 = vld [vmem:[#allocation16 + $0x348] sm:$0xff]  ;;  %v807_v50 = vld [vmem:[#allocation16 + $0x340] sm:$0xff]  ;;  %v818_v55 = vld [vmem:[#allocation16 + $0x398] sm:$0xff]  ;;  %p2431_p12 = pnand %p2430_p11, %p2424_p8 }
  0x85   :  { %2142 = vmatprep.subr.mxu0 %v272_v7  ;;  %2136 = vmatpush3.msra.mxu1 %v270_v9  ;;  %v800_v51 = vld [vmem:[#allocation16 + $0x308] sm:$0xff]  ;;  %v799_v54 = vld [vmem:[#allocation16 + $0x300] sm:$0xff]  ;;  %v817_v57 = vld [vmem:[#allocation16 + $0x390] sm:$0xff] }
  0x86   :  { %2143 = vmatpush3.msra.mxu0 %v272_v7  ;;  %2151 = vmatprep.subr.mxu1 %v453_v17  ;;  %v792_v56 = vld [vmem:[#allocation16 + $0x2c8] sm:$0xff]  ;;  %v791_v58 = vld [vmem:[#allocation16 + $0x2c0] sm:$0xff]  ;;  %v810_v59 = vld [vmem:[#allocation16 + $0x358] sm:$0xff] }
  0x87   :  { %2144 = vmatprep.subr.mxu0 %v271_v8  ;;  %v784_v60 = vld [vmem:[#allocation16 + $0x288] sm:$0xff]  ;;  %v809_v61 = vld [vmem:[#allocation16 + $0x350] sm:$0xff]  ;;  %v783_v62 = vld [vmem:[#allocation16 + $0x280] sm:$0xff] }
  0x88   :  { %2145 = vmatpush3.msra.mxu0 %v271_v8  ;;  %v802_v63 = vld [vmem:[#allocation16 + $0x318] sm:$0xff]  ;;  %v776_v0 = vld [vmem:[#allocation16 + $0x248] sm:$0xff]  ;;  %v801_v1 = vld [vmem:[#allocation16 + $0x310] sm:$0xff] }
  0x89   :  { %2146 = vmatprep.subr.mxu0 %v270_v9  ;;  %v775_v2 = vld [vmem:[#allocation16 + $0x240] sm:$0xff]  ;;  %v794_v3 = vld [vmem:[#allocation16 + $0x2d8] sm:$0xff]  ;;  %v793_v4 = vld [vmem:[#allocation16 + $0x2d0] sm:$0xff] }
  0x8a   :  { %2147 = vmatpush3.msra.mxu0 %v270_v9  ;;  %v786_v5 = vld [vmem:[#allocation16 + $0x298] sm:$0xff]  ;;  %v785_v6 = vld [vmem:[#allocation16 + $0x290] sm:$0xff]  ;;  %v768_v9 = vld [vmem:[#allocation16 + $0x208] sm:$0xff] }
  0x8b   :  { %2162 = vmatprep.subr.mxu0 %v542_v18  ;;  %v778_v7 = vld [vmem:[#allocation16 + $0x258] sm:$0xff]  ;;  %v777_v8 = vld [vmem:[#allocation16 + $0x250] sm:$0xff] }
 0x143   :  { %v2128_v11 = vpop.f32.mrf.mxu0 }
 0x144   :  { %v267_v12 = vadd.f32 %v2128_v11, %v2061_v10  ;;  %v767_v11 = vld [vmem:[#allocation16 + $0x200] sm:$0xff] }
 0x145   :  { %v261_v13 = vpop.f32.mrf.mxu0 }
 0x146   :  { %v262_v14 = vadd.f32 %v2061_v10, %v261_v13  ;;  %v356_v16 = vmul.f32 %v267_v12, %v267_v12  ;;  %v770_v10 = vld [vmem:[#allocation16 + $0x218] sm:$0xff]  ;;  %v760_v13 = vld [vmem:[#allocation16 + $0x1c8] sm:$0xff] }
 0x148   :  { %v355_v15 = vmul.f32 %v262_v14, %v262_v14  ;;  %2137 = vmatprep.mubr.msk.f32.mxu1 %vm188_vm0, %v262_v14 }
 0x149   :  { %2138 = vmatmul.mubr.msk.f32.vlgmr.msra.gmra.mxu1 %vm188_vm0, %v267_v12 }
 0x14a   :  { %2148 = vmatprep.mubr.msk.f32.mxu0 %vm188_vm0, %v355_v15  ;;  %2152 = vmatpush3.msra.mxu1 %v453_v17  ;;  %v759_v15 = vld [vmem:[#allocation16 + $0x1c0] sm:$0xff]  ;;  %v752_v17 = vld [vmem:[#allocation16 + $0x188] sm:$0xff] }
 0x14b   :  { %2149 = vmatmul.mubr.msk.f32.vlgmr.msra.gmra.mxu0 %vm188_vm0, %v356_v16  ;;  %2153 = vmatprep.subr.mxu1 %v452_v19  ;;  %v761_v16 = vld [vmem:[#allocation16 + $0x1d0] sm:$0xff] }
 0x14c   :  { %2163 = vmatpush3.msra.mxu0 %v542_v18  ;;  %2154 = vmatpush3.msra.mxu1 %v452_v19  ;;  %v754_v18 = vld [vmem:[#allocation16 + $0x198] sm:$0xff]  ;;  %v751_v19 = vld [vmem:[#allocation16 + $0x180] sm:$0xff] }
 0x14d   :  { %2164 = vmatprep.subr.mxu0 %v541_v20  ;;  %2155 = vmatprep.subr.mxu1 %v451_v21 }
 0x14e   :  { %2165 = vmatpush3.msra.mxu0 %v541_v20  ;;  %2156 = vmatpush3.msra.mxu1 %v451_v21  ;;  %v753_v20 = vld [vmem:[#allocation16 + $0x190] sm:$0xff]  ;;  %v744_v21 = vld [vmem:[#allocation16 + $0x148] sm:$0xff] }
 0x14f   :  { %2166 = vmatprep.subr.mxu0 %v540_v22  ;;  %2157 = vmatprep.subr.mxu1 %v450_v23 }
 0x150   :  { %2167 = vmatpush3.msra.mxu0 %v540_v22  ;;  %2158 = vmatpush3.msra.mxu1 %v450_v23  ;;  %v746_v22 = vld [vmem:[#allocation16 + $0x158] sm:$0xff]  ;;  %v743_v23 = vld [vmem:[#allocation16 + $0x140] sm:$0xff] }
 0x151   :  { %2168 = vmatprep.subr.mxu0 %v539_v24  ;;  %2173 = vmatprep.subr.mxu1 %v625_v25 }
 0x152   :  { %2169 = vmatpush3.msra.mxu0 %v539_v24  ;;  %v745_v24 = vld [vmem:[#allocation16 + $0x150] sm:$0xff] }
 0x153   :  { %831 = vmatprep.subr.mxu0 %v824_v26  ;;  %v738_v26 = vld [vmem:[#allocation16 + $0x118] sm:$0xff] }
 0x209   :  { %v2139_v27 = vpop.f32.mrf.mxu1 }
 0x20a   :  { %v439_v28 = vmul.f32 %v2139_v27, %v2139_v27  ;;  %v443_v40 = vsub.f32 %v267_v12, %v2139_v27  ;;  %v769_v12 = vld [vmem:[#allocation16 + $0x210] sm:$0xff]  ;;  %v735_v27 = vld [vmem:[#allocation16 + $0x100] sm:$0xff] }
 0x20b   :  { %v346_v29 = vpop.f32.mrf.mxu1  ;;  %v2150_v30 = vpop.f32.mrf.mxu0 }
 0x20c   :  { %v438_v31 = vmul.f32 %v346_v29, %v346_v29  ;;  %v441_v32 = vsub.f32 %v2150_v30, %v439_v28  ;;  %v442_v38 = vsub.f32 %v262_v14, %v346_v29  ;;  %v762_v14 = vld [vmem:[#allocation16 + $0x1d8] sm:$0xff]  ;;  %v737_v28 = vld [vmem:[#allocation16 + $0x110] sm:$0xff]  ;;  %v728_v29 = vld [vmem:[#allocation16 + $0xc8] sm:$0xff] }
 0x20d   :  { %v429_v33 = vpop.f32.mrf.mxu0  ;;  %v730_v30 = vld [vmem:[#allocation16 + $0xd8] sm:$0xff] }
 0x20e   :  { %v445_v34 = vadd.f32 1e-05, %v441_v32  ;;  %v440_v35 = vsub.f32 %v429_v33, %v438_v31  ;;  %v727_v31 = vld [vmem:[#allocation16 + $0xc0] sm:$0xff]  ;;  %v729_v32 = vld [vmem:[#allocation16 + $0xd0] sm:$0xff]  ;;  %v720_v33 = vld [vmem:[#allocation16 + $0x88] sm:$0xff] }
 0x210   :  { %v444_v36 = vadd.f32 1e-05, %v440_v35  ;;  %2211 = vrsqrt.f32 %v445_v34  ;;  %v722_v34 = vld [vmem:[#allocation16 + $0x98] sm:$0xff]  ;;  %v719_v35 = vld [vmem:[#allocation16 + $0x80] sm:$0xff] }
 0x212   :  { %2213 = vrsqrt.f32 %v444_v36  ;;  %v721_v36 = vld [vmem:[#allocation16 + $0x90] sm:$0xff] }
 0x21d   :  { %v2212_v37 = vpop.eup %2211 }
 0x21e   :  { %v449_v42 = vmul.f32 %v2212_v37, %v443_v40  ;;  %v712_v37 = vld [vmem:[#allocation16 + $0x48] sm:$0xff]  ;;  %v713_v40 = vld [vmem:[#allocation16 + $0x50] sm:$0xff] }
 0x21f   :  { %v2214_v39 = vpop.eup %2213 }
 0x220   :  { %v448_v41 = vmul.f32 %v2214_v39, %v442_v38  ;;  %v714_v38 = vld [vmem:[#allocation16 + $0x58] sm:$0xff]  ;;  %v711_v39 = vld [vmem:[#allocation16 + $0x40] sm:$0xff] }
 0x222   :  { %2159 = vmatprep.mubr.msk.f32.mxu1 %vm188_vm0, %v448_v41  ;;  %2170 = vmatprep.mubr.msk.f32.mxu0 %vm188_vm0, %v448_v41 }
 0x223   :  { %2160 = vmatmul.mubr.msk.f32.vlgmr.msra.gmra.mxu1 %vm188_vm0, %v449_v42  ;;  %2171 = vmatmul.mubr.msk.f32.vlgmr.msra.gmra.mxu0 %vm188_vm0, %v449_v42 }
 0x224   :  { %2174 = vmatpush3.msra.mxu1 %v625_v25  ;;  %2181 = vmatprep.mubr.msk.f32.mxu1 %vm188_vm0, %v448_v41  ;;  %v736_v25 = vld [vmem:[#allocation16 + $0x108] sm:$0xff] }
 0x225   :  { %2175 = vmatprep.subr.mxu1 %v624_v43  ;;  %832 = vmatpush1.msra.mxu0 %v823_v44  ;;  %v704_v41 = vld [vmem:[#allocation16 + $0x8] sm:$0xff]  ;;  %v705_v44 = vld [vmem:[#allocation16 + $0x10] sm:$0xff] }
 0x226   :  { %2176 = vmatpush3.msra.mxu1 %v624_v43  ;;  %833 = vmatprep.subr.mxu0 %v816_v45  ;;  %v703_v43 = vld [vmem:[#allocation16] sm:$0xff]  ;;  %v828_v45 = vld [vmem:[#allocation16 + $0x3e8] sm:$0xff] }
 0x227   :  { %2177 = vmatprep.subr.mxu1 %v623_v46  ;;  %834 = vmatpush1.msra.mxu0 %v815_v47  ;;  %v2513_v47 = vmov 0.0  }
 0x228   :  { %2178 = vmatpush3.msra.mxu1 %v623_v46  ;;  %835 = vmatprep.subr.mxu0 %v808_v48  ;;  %v830_v46 = vld [vmem:[#allocation16 + $0x3f8] sm:$0xff]  ;;  %1958 = vst [vmem:[#allocation22] sm:$0x3] %v2513_v47 }
 0x229   :  { %2179 = vmatprep.subr.mxu1 %v622_v49  ;;  %836 = vmatpush1.msra.mxu0 %v807_v50 }
 0x22a   :  { %2180 = vmatpush3.msra.mxu1 %v622_v49  ;;  %837 = vmatprep.subr.mxu0 %v800_v51 }
 0x22b   :  { %2182 = vmatmul.mubr.msk.f32.vlgmr.msra.gmra.mxu1 %vm188_vm0, %v449_v42  ;;  %908 = vmatprep.subr.mxu1 %v826_v52  ;;  %v706_v42 = vld [vmem:[#allocation16 + $0x18] sm:$0xff] }
 0x22c   :  { %909 = vmatpush1.msra.mxu1 %v825_v53  ;;  %838 = vmatpush1.msra.mxu0 %v799_v54 }
 0x22d   :  { %910 = vmatprep.subr.mxu1 %v818_v55  ;;  %839 = vmatprep.subr.mxu0 %v792_v56 }
 0x22e   :  { %911 = vmatpush1.msra.mxu1 %v817_v57  ;;  %840 = vmatpush1.msra.mxu0 %v791_v58  ;;  %v827_v58 = vld [vmem:[#allocation16 + $0x3e0] sm:$0xff] }
 0x22f   :  { %912 = vmatprep.subr.mxu1 %v810_v59  ;;  %841 = vmatprep.subr.mxu0 %v784_v60  ;;  %v829_v59 = vld [vmem:[#allocation16 + $0x3f0] sm:$0xff] }
 0x230   :  { %913 = vmatpush1.msra.mxu1 %v809_v61  ;;  %842 = vmatpush1.msra.mxu0 %v783_v62  ;;  %v820_v61 = vld [vmem:[#allocation16 + $0x3a8] sm:$0xff]  ;;  %v822_v62 = vld [vmem:[#allocation16 + $0x3b8] sm:$0xff] }
 0x231   :  { %914 = vmatprep.subr.mxu1 %v802_v63  ;;  %843 = vmatprep.subr.mxu0 %v776_v0  ;;  %v819_v63 = vld [vmem:[#allocation16 + $0x3a0] sm:$0xff]  ;;  %v821_v0 = vld [vmem:[#allocation16 + $0x3b0] sm:$0xff] }
 0x232   :  { %915 = vmatpush1.msra.mxu1 %v801_v1  ;;  %844 = vmatpush1.msra.mxu0 %v775_v2  ;;  %v812_v1 = vld [vmem:[#allocation16 + $0x368] sm:$0xff]  ;;  %v814_v2 = vld [vmem:[#allocation16 + $0x378] sm:$0xff] }
 0x233   :  { %916 = vmatprep.subr.mxu1 %v794_v3  ;;  %845 = vmatprep.subr.mxu0 %v768_v9  ;;  %v811_v3 = vld [vmem:[#allocation16 + $0x360] sm:$0xff]  ;;  %v805_v9 = vld [vmem:[#allocation16 + $0x330] sm:$0xff] }
 0x234   :  { %917 = vmatpush1.msra.mxu1 %v793_v4  ;;  %846 = vmatpush1.msra.mxu0 %v767_v11  ;;  %v813_v4 = vld [vmem:[#allocation16 + $0x370] sm:$0xff]  ;;  %v798_v11 = vld [vmem:[#allocation16 + $0x2f8] sm:$0xff] }
 0x235   :  { %918 = vmatprep.subr.mxu1 %v786_v5  ;;  %847 = vmatprep.subr.mxu0 %v760_v13  ;;  %v797_v13 = vld [vmem:[#allocation16 + $0x2f0] sm:$0xff] }
 0x236   :  { %919 = vmatpush1.msra.mxu1 %v785_v6  ;;  %848 = vmatpush1.msra.mxu0 %v759_v15  ;;  %v804_v6 = vld [vmem:[#allocation16 + $0x328] sm:$0xff]  ;;  %v790_v15 = vld [vmem:[#allocation16 + $0x2b8] sm:$0xff] }
 0x237   :  { %920 = vmatprep.subr.mxu1 %v778_v7  ;;  %849 = vmatprep.subr.mxu0 %v752_v17  ;;  %v806_v7 = vld [vmem:[#allocation16 + $0x338] sm:$0xff]  ;;  %v789_v17 = vld [vmem:[#allocation16 + $0x2b0] sm:$0xff] }
 0x238   :  { %921 = vmatpush1.msra.mxu1 %v777_v8  ;;  %850 = vmatpush1.msra.mxu0 %v751_v19  ;;  %v803_v8 = vld [vmem:[#allocation16 + $0x320] sm:$0xff]  ;;  %v782_v19 = vld [vmem:[#allocation16 + $0x278] sm:$0xff] }
 0x239   :  { %922 = vmatprep.subr.mxu1 %v770_v10  ;;  %851 = vmatprep.subr.mxu0 %v744_v21  ;;  %v796_v10 = vld [vmem:[#allocation16 + $0x2e8] sm:$0xff]  ;;  %v781_v21 = vld [vmem:[#allocation16 + $0x270] sm:$0xff] }
 0x23a   :  { %923 = vmatpush1.msra.mxu1 %v769_v12  ;;  %852 = vmatpush1.msra.mxu0 %v743_v23  ;;  %v795_v12 = vld [vmem:[#allocation16 + $0x2e0] sm:$0xff]  ;;  %v774_v23 = vld [vmem:[#allocation16 + $0x238] sm:$0xff] }
 0x23b   :  { %924 = vmatprep.subr.mxu1 %v762_v14  ;;  %853 = vmatprep.subr.mxu0 %v736_v25  ;;  %v788_v14 = vld [vmem:[#allocation16 + $0x2a8] sm:$0xff]  ;;  %v773_v25 = vld [vmem:[#allocation16 + $0x230] sm:$0xff] }
 0x23c   :  { %925 = vmatpush1.msra.mxu1 %v761_v16  ;;  %854 = vmatpush1.msra.mxu0 %v735_v27  ;;  %v787_v16 = vld [vmem:[#allocation16 + $0x2a0] sm:$0xff]  ;;  %v766_v27 = vld [vmem:[#allocation16 + $0x1f8] sm:$0xff] }
 0x23d   :  { %926 = vmatprep.subr.mxu1 %v754_v18  ;;  %855 = vmatprep.subr.mxu0 %v728_v29  ;;  %v780_v18 = vld [vmem:[#allocation16 + $0x268] sm:$0xff]  ;;  %v765_v29 = vld [vmem:[#allocation16 + $0x1f0] sm:$0xff] }
 0x23e   :  { %927 = vmatpush1.msra.mxu1 %v753_v20  ;;  %856 = vmatpush1.msra.mxu0 %v727_v31  ;;  %v779_v20 = vld [vmem:[#allocation16 + $0x260] sm:$0xff]  ;;  %v758_v31 = vld [vmem:[#allocation16 + $0x1b8] sm:$0xff] }
 0x23f   :  { %928 = vmatprep.subr.mxu1 %v746_v22  ;;  %857 = vmatprep.subr.mxu0 %v720_v33  ;;  %v772_v22 = vld [vmem:[#allocation16 + $0x228] sm:$0xff]  ;;  %v757_v33 = vld [vmem:[#allocation16 + $0x1b0] sm:$0xff] }
 0x240   :  { %929 = vmatpush1.msra.mxu1 %v745_v24  ;;  %858 = vmatpush1.msra.mxu0 %v719_v35  ;;  %v771_v24 = vld [vmem:[#allocation16 + $0x220] sm:$0xff]  ;;  %v750_v35 = vld [vmem:[#allocation16 + $0x178] sm:$0xff] }
 0x241   :  { %930 = vmatprep.subr.mxu1 %v738_v26  ;;  %859 = vmatprep.subr.mxu0 %v712_v37  ;;  %v764_v26 = vld [vmem:[#allocation16 + $0x1e8] sm:$0xff]  ;;  %v749_v37 = vld [vmem:[#allocation16 + $0x170] sm:$0xff] }
 0x242   :  { %931 = vmatpush1.msra.mxu1 %v737_v28  ;;  %860 = vmatpush1.msra.mxu0 %v711_v39  ;;  %v763_v28 = vld [vmem:[#allocation16 + $0x1e0] sm:$0xff]  ;;  %v742_v39 = vld [vmem:[#allocation16 + $0x138] sm:$0xff] }
 0x243   :  { %932 = vmatprep.subr.mxu1 %v730_v30  ;;  %861 = vmatprep.subr.mxu0 %v704_v41  ;;  %v756_v30 = vld [vmem:[#allocation16 + $0x1a8] sm:$0xff]  ;;  %v741_v41 = vld [vmem:[#allocation16 + $0x130] sm:$0xff] }
 0x244   :  { %933 = vmatpush1.msra.mxu1 %v729_v32  ;;  %862 = vmatpush1.msra.mxu0 %v703_v43  ;;  %v755_v32 = vld [vmem:[#allocation16 + $0x1a0] sm:$0xff]  ;;  %v734_v43 = vld [vmem:[#allocation16 + $0xf8] sm:$0xff] }
 0x245   :  { %934 = vmatprep.subr.mxu1 %v722_v34  ;;  %895 = vmatprep.mubr.f32.mxu0 %v2513_v47  ;;  %v748_v34 = vld [vmem:[#allocation16 + $0x168] sm:$0xff] }
 0x246   :  { %935 = vmatpush1.msra.mxu1 %v721_v36  ;;  %972 = vmatprep.mubr.f32.mxu1 %v2513_v47  ;;  %v747_v36 = vld [vmem:[#allocation16 + $0x160] sm:$0xff] }
 0x247   :  { %936 = vmatprep.subr.mxu1 %v714_v38  ;;  %985 = vmatprep.subr.mxu0 %v828_v45  ;;  %v740_v38 = vld [vmem:[#allocation16 + $0x128] sm:$0xff]  ;;  %v733_v45 = vld [vmem:[#allocation16 + $0xf0] sm:$0xff] }
 0x248   :  { %937 = vmatpush1.msra.mxu1 %v713_v40  ;;  %v739_v40 = vld [vmem:[#allocation16 + $0x120] sm:$0xff] }
 0x249   :  { %938 = vmatprep.subr.mxu1 %v706_v42  ;;  %v732_v42 = vld [vmem:[#allocation16 + $0xe8] sm:$0xff] }
 0x24a   :  { %939 = vmatpush1.msra.mxu1 %v705_v44  ;;  %v731_v44 = vld [vmem:[#allocation16 + $0xe0] sm:$0xff] }
 0x24b   :  { %1062 = vmatprep.subr.mxu1 %v830_v46  ;;  %v724_v46 = vld [vmem:[#allocation16 + $0xa8] sm:$0xff] }
 0x2e3   :  { %v2161_v48 = vpop.f32.mrf.mxu1  ;;  %v2172_v49 = vpop.f32.mrf.mxu0 }
 0x2e4   :  { %v537_v50 = vmul.f32 1.442695, %v2161_v48  ;;  %v620_v55 = vmul.f32 1.442695, %v2172_v49  ;;  %v726_v48 = vld [vmem:[#allocation16 + $0xb8] sm:$0xff]  ;;  %v723_v49 = vld [vmem:[#allocation16 + $0xa0] sm:$0xff] }
 0x2e5   :  { %v526_v51 = vpop.f32.mrf.mxu1  ;;  %v609_v52 = vpop.f32.mrf.mxu0 }
 0x2e6   :  { %2215 = vpow2.f32 %v537_v50  ;;  %v535_v53 = vmul.f32 1.442695, %v526_v51  ;;  %v618_v54 = vmul.f32 1.442695, %v609_v52  ;;  %v725_v50 = vld [vmem:[#allocation16 + $0xb0] sm:$0xff]  ;;  %v716_v51 = vld [vmem:[#allocation16 + $0x68] sm:$0xff] }
 0x2e7   :  { %v718_v52 = vld [vmem:[#allocation16 + $0x78] sm:$0xff] }
 0x2e8   :  { %2217 = vpow2.f32 %v535_v53  ;;  %v715_v53 = vld [vmem:[#allocation16 + $0x60] sm:$0xff] }
 0x2e9   :  { %2219 = vpow2.f32 %v618_v54  ;;  %v717_v54 = vld [vmem:[#allocation16 + $0x70] sm:$0xff] }
 0x2ea   :  { %2221 = vpow2.f32 %v620_v55  ;;  %v708_v55 = vld [vmem:[#allocation16 + $0x28] sm:$0xff] }
 0x2f3   :  { %v2216_v56 = vpop.eup %2215 }
 0x2f4   :  { %702 = vst [vmem:[#allocation19 + $0x8] sm:$0xff] %v2216_v56  ;;  %v710_v56 = vld [vmem:[#allocation16 + $0x38] sm:$0xff] }
 0x2f5   :  { %v2218_v57 = vpop.eup %2217 }
 0x2f6   :  { %v2655_v60 = vpop.eup %2219  ;;  %701 = vst [vmem:[#allocation19] sm:$0xff] %v2218_v57  ;;  %v707_v57 = vld [vmem:[#allocation16 + $0x20] sm:$0xff] }
 0x2f7   :  { %896 = vmatmul.mubr.f32.vlgmr.msra.gmra.mxu0 %v2655_v60  ;;  %973 = vmatmul.mubr.f32.vlgmr.msra.gmra.mxu1 %v2655_v60  ;;  %v2661_v5 = vpop.eup %2221 }
 0x2f8   :  { %986 = vmatpush1.msra.mxu0 %v827_v58  ;;  %1063 = vmatpush1.msra.mxu1 %v829_v59  ;;  %v709_v58 = vld [vmem:[#allocation16 + $0x30] sm:$0xff]  ;;  %v1260_v59 = vld [vmem:[#allocation17 + $0x3c8] sm:$0xff] }
 0x2f9   :  { %987 = vmatprep.subr.mxu0 %v820_v61  ;;  %1064 = vmatprep.subr.mxu1 %v822_v62  ;;  %v1262_v61 = vld [vmem:[#allocation17 + $0x3d8] sm:$0xff]  ;;  %v1259_v62 = vld [vmem:[#allocation17 + $0x3c0] sm:$0xff] }
 0x2fa   :  { %988 = vmatpush1.msra.mxu0 %v819_v63  ;;  %1065 = vmatpush1.msra.mxu1 %v821_v0  ;;  %v1261_v63 = vld [vmem:[#allocation17 + $0x3d0] sm:$0xff]  ;;  %v1252_v0 = vld [vmem:[#allocation17 + $0x388] sm:$0xff] }
 0x2fb   :  { %901 = vmatprep.mubr.f32.mxu0 %v2513_v47  ;;  %978 = vmatprep.mubr.f32.mxu1 %v2513_v47 }
 0x2fc   :  { %989 = vmatprep.subr.mxu0 %v812_v1  ;;  %1066 = vmatprep.subr.mxu1 %v814_v2  ;;  %v1254_v1 = vld [vmem:[#allocation17 + $0x398] sm:$0xff]  ;;  %v1251_v2 = vld [vmem:[#allocation17 + $0x380] sm:$0xff] }
 0x2fd   :  { %902 = vmatmul.mubr.f32.gmra.mxu0 %v2661_v5  ;;  %979 = vmatmul.mubr.f32.gmra.mxu1 %v2661_v5 }
 0x2fe   :  { %990 = vmatpush1.msra.mxu0 %v811_v3  ;;  %1067 = vmatpush1.msra.mxu1 %v813_v4  ;;  %v1253_v3 = vld [vmem:[#allocation17 + $0x390] sm:$0xff]  ;;  %v1244_v4 = vld [vmem:[#allocation17 + $0x348] sm:$0xff] }
 0x2ff   :  { %991 = vmatprep.subr.mxu0 %v804_v6  ;;  %1068 = vmatprep.subr.mxu1 %v806_v7  ;;  %v1246_v6 = vld [vmem:[#allocation17 + $0x358] sm:$0xff]  ;;  %v1243_v7 = vld [vmem:[#allocation17 + $0x340] sm:$0xff] }
 0x300   :  { %992 = vmatpush1.msra.mxu0 %v803_v8  ;;  %1069 = vmatpush1.msra.mxu1 %v805_v9  ;;  %v1245_v8 = vld [vmem:[#allocation17 + $0x350] sm:$0xff]  ;;  %v1236_v9 = vld [vmem:[#allocation17 + $0x308] sm:$0xff] }
 0x301   :  { %993 = vmatprep.subr.mxu0 %v796_v10  ;;  %1070 = vmatprep.subr.mxu1 %v798_v11  ;;  %v1238_v10 = vld [vmem:[#allocation17 + $0x318] sm:$0xff]  ;;  %v1235_v11 = vld [vmem:[#allocation17 + $0x300] sm:$0xff] }
 0x302   :  { %994 = vmatpush1.msra.mxu0 %v795_v12  ;;  %1071 = vmatpush1.msra.mxu1 %v797_v13  ;;  %v1237_v12 = vld [vmem:[#allocation17 + $0x310] sm:$0xff]  ;;  %v1228_v13 = vld [vmem:[#allocation17 + $0x2c8] sm:$0xff] }
 0x303   :  { %995 = vmatprep.subr.mxu0 %v788_v14  ;;  %1072 = vmatprep.subr.mxu1 %v790_v15  ;;  %v1230_v14 = vld [vmem:[#allocation17 + $0x2d8] sm:$0xff]  ;;  %v1227_v15 = vld [vmem:[#allocation17 + $0x2c0] sm:$0xff] }
 0x304   :  { %996 = vmatpush1.msra.mxu0 %v787_v16  ;;  %1073 = vmatpush1.msra.mxu1 %v789_v17  ;;  %v1229_v16 = vld [vmem:[#allocation17 + $0x2d0] sm:$0xff]  ;;  %v1220_v17 = vld [vmem:[#allocation17 + $0x288] sm:$0xff] }
 0x305   :  { %997 = vmatprep.subr.mxu0 %v780_v18  ;;  %1074 = vmatprep.subr.mxu1 %v782_v19  ;;  %v1222_v18 = vld [vmem:[#allocation17 + $0x298] sm:$0xff]  ;;  %v1219_v19 = vld [vmem:[#allocation17 + $0x280] sm:$0xff] }
 0x306   :  { %998 = vmatpush1.msra.mxu0 %v779_v20  ;;  %1075 = vmatpush1.msra.mxu1 %v781_v21  ;;  %v1221_v20 = vld [vmem:[#allocation17 + $0x290] sm:$0xff]  ;;  %v1212_v21 = vld [vmem:[#allocation17 + $0x248] sm:$0xff] }
 0x307   :  { %999 = vmatprep.subr.mxu0 %v772_v22  ;;  %1076 = vmatprep.subr.mxu1 %v774_v23  ;;  %v1214_v22 = vld [vmem:[#allocation17 + $0x258] sm:$0xff]  ;;  %v1211_v23 = vld [vmem:[#allocation17 + $0x240] sm:$0xff] }
 0x308   :  { %1000 = vmatpush1.msra.mxu0 %v771_v24  ;;  %1077 = vmatpush1.msra.mxu1 %v773_v25  ;;  %v1213_v24 = vld [vmem:[#allocation17 + $0x250] sm:$0xff]  ;;  %v1204_v25 = vld [vmem:[#allocation17 + $0x208] sm:$0xff] }
 0x309   :  { %1001 = vmatprep.subr.mxu0 %v764_v26  ;;  %1078 = vmatprep.subr.mxu1 %v766_v27  ;;  %v1206_v26 = vld [vmem:[#allocation17 + $0x218] sm:$0xff]  ;;  %v1203_v27 = vld [vmem:[#allocation17 + $0x200] sm:$0xff] }
 0x30a   :  { %1002 = vmatpush1.msra.mxu0 %v763_v28  ;;  %1079 = vmatpush1.msra.mxu1 %v765_v29  ;;  %v1205_v28 = vld [vmem:[#allocation17 + $0x210] sm:$0xff]  ;;  %v1196_v29 = vld [vmem:[#allocation17 + $0x1c8] sm:$0xff] }
 0x30b   :  { %1003 = vmatprep.subr.mxu0 %v756_v30  ;;  %1080 = vmatprep.subr.mxu1 %v758_v31  ;;  %v1198_v30 = vld [vmem:[#allocation17 + $0x1d8] sm:$0xff]  ;;  %v1195_v31 = vld [vmem:[#allocation17 + $0x1c0] sm:$0xff] }
 0x30c   :  { %1004 = vmatpush1.msra.mxu0 %v755_v32  ;;  %1081 = vmatpush1.msra.mxu1 %v757_v33  ;;  %v1197_v32 = vld [vmem:[#allocation17 + $0x1d0] sm:$0xff]  ;;  %v1188_v33 = vld [vmem:[#allocation17 + $0x188] sm:$0xff] }
 0x30d   :  { %1005 = vmatprep.subr.mxu0 %v748_v34  ;;  %1082 = vmatprep.subr.mxu1 %v750_v35  ;;  %v1190_v34 = vld [vmem:[#allocation17 + $0x198] sm:$0xff]  ;;  %v1187_v35 = vld [vmem:[#allocation17 + $0x180] sm:$0xff] }
 0x30e   :  { %1006 = vmatpush1.msra.mxu0 %v747_v36  ;;  %1083 = vmatpush1.msra.mxu1 %v749_v37  ;;  %v1189_v36 = vld [vmem:[#allocation17 + $0x190] sm:$0xff]  ;;  %v1180_v37 = vld [vmem:[#allocation17 + $0x148] sm:$0xff] }
 0x30f   :  { %1007 = vmatprep.subr.mxu0 %v740_v38  ;;  %1084 = vmatprep.subr.mxu1 %v742_v39  ;;  %v1182_v38 = vld [vmem:[#allocation17 + $0x158] sm:$0xff]  ;;  %v1179_v39 = vld [vmem:[#allocation17 + $0x140] sm:$0xff] }
 0x310   :  { %1008 = vmatpush1.msra.mxu0 %v739_v40  ;;  %1085 = vmatpush1.msra.mxu1 %v741_v41  ;;  %v1181_v40 = vld [vmem:[#allocation17 + $0x150] sm:$0xff]  ;;  %v1172_v41 = vld [vmem:[#allocation17 + $0x108] sm:$0xff] }
 0x311   :  { %1009 = vmatprep.subr.mxu0 %v732_v42  ;;  %1086 = vmatprep.subr.mxu1 %v734_v43  ;;  %v1174_v42 = vld [vmem:[#allocation17 + $0x118] sm:$0xff]  ;;  %v1171_v43 = vld [vmem:[#allocation17 + $0x100] sm:$0xff] }
 0x312   :  { %1010 = vmatpush1.msra.mxu0 %v731_v44  ;;  %1087 = vmatpush1.msra.mxu1 %v733_v45  ;;  %v1173_v44 = vld [vmem:[#allocation17 + $0x110] sm:$0xff]  ;;  %v1164_v45 = vld [vmem:[#allocation17 + $0xc8] sm:$0xff] }
 0x313   :  { %1011 = vmatprep.subr.mxu0 %v724_v46  ;;  %1088 = vmatprep.subr.mxu1 %v726_v48  ;;  %v1166_v46 = vld [vmem:[#allocation17 + $0xd8] sm:$0xff]  ;;  %v1163_v48 = vld [vmem:[#allocation17 + $0xc0] sm:$0xff] }
 0x314   :  { %1012 = vmatpush1.msra.mxu0 %v723_v49  ;;  %1089 = vmatpush1.msra.mxu1 %v725_v50  ;;  %v1165_v49 = vld [vmem:[#allocation17 + $0xd0] sm:$0xff]  ;;  %v1156_v50 = vld [vmem:[#allocation17 + $0x88] sm:$0xff] }
 0x315   :  { %1013 = vmatprep.subr.mxu0 %v716_v51  ;;  %1090 = vmatprep.subr.mxu1 %v718_v52  ;;  %v1158_v51 = vld [vmem:[#allocation17 + $0x98] sm:$0xff]  ;;  %v1155_v52 = vld [vmem:[#allocation17 + $0x80] sm:$0xff] }
 0x316   :  { %1014 = vmatpush1.msra.mxu0 %v715_v53  ;;  %1091 = vmatpush1.msra.mxu1 %v717_v54  ;;  %v1157_v53 = vld [vmem:[#allocation17 + $0x90] sm:$0xff]  ;;  %v1148_v54 = vld [vmem:[#allocation17 + $0x48] sm:$0xff] }
 0x317   :  { %1015 = vmatprep.subr.mxu0 %v708_v55  ;;  %1092 = vmatprep.subr.mxu1 %v710_v56  ;;  %v1150_v55 = vld [vmem:[#allocation17 + $0x58] sm:$0xff]  ;;  %v1147_v56 = vld [vmem:[#allocation17 + $0x40] sm:$0xff] }
 0x318   :  { %1016 = vmatpush1.msra.mxu0 %v707_v57  ;;  %1049 = vmatprep.mubr.f32.mxu0 %v2513_v47  ;;  %v1149_v57 = vld [vmem:[#allocation17 + $0x50] sm:$0xff] }
 0x319   :  { %1093 = vmatpush1.msra.mxu1 %v709_v58  ;;  %1126 = vmatprep.mubr.f32.mxu1 %v2513_v47  ;;  %v1140_v58 = vld [vmem:[#allocation17 + $0x8] sm:$0xff] }
 0x31a   :  { %1050 = vmatmul.mubr.f32.vlgmr.msra.gmra.mxu0 %v2655_v60  ;;  %1127 = vmatmul.mubr.f32.vlgmr.msra.gmra.mxu1 %v2655_v60 }
 0x31b   :  { %1267 = vmatprep.subr.mxu0 %v1260_v59  ;;  %1344 = vmatprep.subr.mxu1 %v1262_v61  ;;  %v1142_v59 = vld [vmem:[#allocation17 + $0x18] sm:$0xff]  ;;  %v2673_v61 = vpop.f32.mrf.mxu1 }
 0x31c   :  { %1268 = vmatpush1.msra.mxu0 %v1259_v62  ;;  %1345 = vmatpush1.msra.mxu1 %v1261_v63  ;;  %v1139_v62 = vld [vmem:[#allocation17] sm:$0xff]  ;;  %v1141_v63 = vld [vmem:[#allocation17 + $0x10] sm:$0xff] }
 0x31d   :  { %1269 = vmatprep.subr.mxu0 %v1252_v0  ;;  %1346 = vmatprep.subr.mxu1 %v1254_v1  ;;  %v1264_v0 = vld [vmem:[#allocation17 + $0x3e8] sm:$0xff]  ;;  %v1266_v1 = vld [vmem:[#allocation17 + $0x3f8] sm:$0xff] }
 0x31e   :  { %1055 = vmatprep.mubr.f32.mxu0 %v2513_v47  ;;  %1132 = vmatprep.mubr.f32.mxu1 %v2513_v47 }
 0x31f   :  { %1270 = vmatpush1.msra.mxu0 %v1251_v2  ;;  %1347 = vmatpush1.msra.mxu1 %v1253_v3  ;;  %v2676_v2 = vpop.f32.mrf.mxu1  ;;  %v1263_v3 = vld [vmem:[#allocation17 + $0x3e0] sm:$0xff] }
 0x320   :  { %1056 = vmatmul.mubr.f32.gmra.mxu0 %v2661_v5  ;;  %1133 = vmatmul.mubr.f32.gmra.mxu1 %v2661_v5 }
 0x321   :  { %1271 = vmatprep.subr.mxu0 %v1244_v4  ;;  %1348 = vmatprep.subr.mxu1 %v1246_v6  ;;  %v1265_v4 = vld [vmem:[#allocation17 + $0x3f0] sm:$0xff]  ;;  %v1256_v6 = vld [vmem:[#allocation17 + $0x3a8] sm:$0xff] }
 0x322   :  { %1272 = vmatpush1.msra.mxu0 %v1243_v7  ;;  %1349 = vmatpush1.msra.mxu1 %v1245_v8  ;;  %v1258_v7 = vld [vmem:[#allocation17 + $0x3b8] sm:$0xff]  ;;  %v1255_v8 = vld [vmem:[#allocation17 + $0x3a0] sm:$0xff] }
 0x323   :  { %1273 = vmatprep.subr.mxu0 %v1236_v9  ;;  %1350 = vmatprep.subr.mxu1 %v1238_v10  ;;  %v1257_v9 = vld [vmem:[#allocation17 + $0x3b0] sm:$0xff]  ;;  %v1248_v10 = vld [vmem:[#allocation17 + $0x368] sm:$0xff] }
 0x324   :  { %1274 = vmatpush1.msra.mxu0 %v1235_v11  ;;  %1351 = vmatpush1.msra.mxu1 %v1237_v12  ;;  %v1250_v11 = vld [vmem:[#allocation17 + $0x378] sm:$0xff]  ;;  %v1247_v12 = vld [vmem:[#allocation17 + $0x360] sm:$0xff] }
 0x325   :  { %1275 = vmatprep.subr.mxu0 %v1228_v13  ;;  %1352 = vmatprep.subr.mxu1 %v1230_v14  ;;  %v1249_v13 = vld [vmem:[#allocation17 + $0x370] sm:$0xff]  ;;  %v1240_v14 = vld [vmem:[#allocation17 + $0x328] sm:$0xff] }
 0x326   :  { %1276 = vmatpush1.msra.mxu0 %v1227_v15  ;;  %1353 = vmatpush1.msra.mxu1 %v1229_v16  ;;  %v1242_v15 = vld [vmem:[#allocation17 + $0x338] sm:$0xff]  ;;  %v1239_v16 = vld [vmem:[#allocation17 + $0x320] sm:$0xff] }
 0x327   :  { %1277 = vmatprep.subr.mxu0 %v1220_v17  ;;  %1354 = vmatprep.subr.mxu1 %v1222_v18  ;;  %v1241_v17 = vld [vmem:[#allocation17 + $0x330] sm:$0xff]  ;;  %v1232_v18 = vld [vmem:[#allocation17 + $0x2e8] sm:$0xff] }
 0x328   :  { %1278 = vmatpush1.msra.mxu0 %v1219_v19  ;;  %1355 = vmatpush1.msra.mxu1 %v1221_v20  ;;  %v1234_v19 = vld [vmem:[#allocation17 + $0x2f8] sm:$0xff]  ;;  %v1231_v20 = vld [vmem:[#allocation17 + $0x2e0] sm:$0xff] }
 0x329   :  { %1279 = vmatprep.subr.mxu0 %v1212_v21  ;;  %1356 = vmatprep.subr.mxu1 %v1214_v22  ;;  %v1233_v21 = vld [vmem:[#allocation17 + $0x2f0] sm:$0xff]  ;;  %v1224_v22 = vld [vmem:[#allocation17 + $0x2a8] sm:$0xff] }
 0x32a   :  { %1280 = vmatpush1.msra.mxu0 %v1211_v23  ;;  %1357 = vmatpush1.msra.mxu1 %v1213_v24  ;;  %v1226_v23 = vld [vmem:[#allocation17 + $0x2b8] sm:$0xff]  ;;  %v1223_v24 = vld [vmem:[#allocation17 + $0x2a0] sm:$0xff] }
 0x32b   :  { %1281 = vmatprep.subr.mxu0 %v1204_v25  ;;  %1358 = vmatprep.subr.mxu1 %v1206_v26  ;;  %v1225_v25 = vld [vmem:[#allocation17 + $0x2b0] sm:$0xff]  ;;  %v1216_v26 = vld [vmem:[#allocation17 + $0x268] sm:$0xff] }
 0x32c   :  { %1282 = vmatpush1.msra.mxu0 %v1203_v27  ;;  %1359 = vmatpush1.msra.mxu1 %v1205_v28  ;;  %v1218_v27 = vld [vmem:[#allocation17 + $0x278] sm:$0xff]  ;;  %v1215_v28 = vld [vmem:[#allocation17 + $0x260] sm:$0xff] }
 0x32d   :  { %1283 = vmatprep.subr.mxu0 %v1196_v29  ;;  %1360 = vmatprep.subr.mxu1 %v1198_v30  ;;  %v1217_v29 = vld [vmem:[#allocation17 + $0x270] sm:$0xff]  ;;  %v1208_v30 = vld [vmem:[#allocation17 + $0x228] sm:$0xff] }
 0x32e   :  { %1284 = vmatpush1.msra.mxu0 %v1195_v31  ;;  %1361 = vmatpush1.msra.mxu1 %v1197_v32  ;;  %v1210_v31 = vld [vmem:[#allocation17 + $0x238] sm:$0xff]  ;;  %v1207_v32 = vld [vmem:[#allocation17 + $0x220] sm:$0xff] }
 0x32f   :  { %1285 = vmatprep.subr.mxu0 %v1188_v33  ;;  %1362 = vmatprep.subr.mxu1 %v1190_v34  ;;  %v1209_v33 = vld [vmem:[#allocation17 + $0x230] sm:$0xff]  ;;  %v1200_v34 = vld [vmem:[#allocation17 + $0x1e8] sm:$0xff] }
 0x330   :  { %1286 = vmatpush1.msra.mxu0 %v1187_v35  ;;  %1363 = vmatpush1.msra.mxu1 %v1189_v36  ;;  %v1202_v35 = vld [vmem:[#allocation17 + $0x1f8] sm:$0xff]  ;;  %v1199_v36 = vld [vmem:[#allocation17 + $0x1e0] sm:$0xff] }
 0x331   :  { %1287 = vmatprep.subr.mxu0 %v1180_v37  ;;  %1364 = vmatprep.subr.mxu1 %v1182_v38  ;;  %v1201_v37 = vld [vmem:[#allocation17 + $0x1f0] sm:$0xff]  ;;  %v1192_v38 = vld [vmem:[#allocation17 + $0x1a8] sm:$0xff] }
 0x332   :  { %1288 = vmatpush1.msra.mxu0 %v1179_v39  ;;  %1365 = vmatpush1.msra.mxu1 %v1181_v40  ;;  %v1194_v39 = vld [vmem:[#allocation17 + $0x1b8] sm:$0xff]  ;;  %v1191_v40 = vld [vmem:[#allocation17 + $0x1a0] sm:$0xff] }
 0x333   :  { %1289 = vmatprep.subr.mxu0 %v1172_v41  ;;  %1366 = vmatprep.subr.mxu1 %v1174_v42  ;;  %v1193_v41 = vld [vmem:[#allocation17 + $0x1b0] sm:$0xff]  ;;  %v1184_v42 = vld [vmem:[#allocation17 + $0x168] sm:$0xff] }
 0x334   :  { %1290 = vmatpush1.msra.mxu0 %v1171_v43  ;;  %1367 = vmatpush1.msra.mxu1 %v1173_v44  ;;  %v1186_v43 = vld [vmem:[#allocation17 + $0x178] sm:$0xff]  ;;  %v1183_v44 = vld [vmem:[#allocation17 + $0x160] sm:$0xff] }
 0x335   :  { %1291 = vmatprep.subr.mxu0 %v1164_v45  ;;  %1368 = vmatprep.subr.mxu1 %v1166_v46  ;;  %v1185_v45 = vld [vmem:[#allocation17 + $0x170] sm:$0xff]  ;;  %v1176_v46 = vld [vmem:[#allocation17 + $0x128] sm:$0xff] }
 0x336   :  { %1292 = vmatpush1.msra.mxu0 %v1163_v48  ;;  %1369 = vmatpush1.msra.mxu1 %v1165_v49  ;;  %v1178_v48 = vld [vmem:[#allocation17 + $0x138] sm:$0xff]  ;;  %v1175_v49 = vld [vmem:[#allocation17 + $0x120] sm:$0xff] }
 0x337   :  { %1293 = vmatprep.subr.mxu0 %v1156_v50  ;;  %1370 = vmatprep.subr.mxu1 %v1158_v51  ;;  %v1177_v50 = vld [vmem:[#allocation17 + $0x130] sm:$0xff]  ;;  %v1168_v51 = vld [vmem:[#allocation17 + $0xe8] sm:$0xff] }
 0x338   :  { %1294 = vmatpush1.msra.mxu0 %v1155_v52  ;;  %1371 = vmatpush1.msra.mxu1 %v1157_v53  ;;  %v1170_v52 = vld [vmem:[#allocation17 + $0xf8] sm:$0xff]  ;;  %v1167_v53 = vld [vmem:[#allocation17 + $0xe0] sm:$0xff] }
 0x339   :  { %1295 = vmatprep.subr.mxu0 %v1148_v54  ;;  %1372 = vmatprep.subr.mxu1 %v1150_v55  ;;  %v1169_v54 = vld [vmem:[#allocation17 + $0xf0] sm:$0xff]  ;;  %v1160_v55 = vld [vmem:[#allocation17 + $0xa8] sm:$0xff] }
 0x33a   :  { %1296 = vmatpush1.msra.mxu0 %v1147_v56  ;;  %1373 = vmatpush1.msra.mxu1 %v1149_v57  ;;  %v1162_v56 = vld [vmem:[#allocation17 + $0xb8] sm:$0xff]  ;;  %v1159_v57 = vld [vmem:[#allocation17 + $0xa0] sm:$0xff] }
 0x33b   :  { %1297 = vmatprep.subr.mxu0 %v1140_v58  ;;  %1374 = vmatprep.subr.mxu1 %v1142_v59  ;;  %v1161_v58 = vld [vmem:[#allocation17 + $0xb0] sm:$0xff]  ;;  %v1152_v59 = vld [vmem:[#allocation17 + $0x68] sm:$0xff] }
 0x33c   :  { %1298 = vmatpush1.msra.mxu0 %v1139_v62  ;;  %1331 = vmatprep.mubr.f32.mxu0 %v2513_v47  ;;  %v1154_v62 = vld [vmem:[#allocation17 + $0x78] sm:$0xff] }
 0x33d   :  { %1375 = vmatpush1.msra.mxu1 %v1141_v63  ;;  %1408 = vmatprep.mubr.f32.mxu1 %v2513_v47  ;;  %v1151_v63 = vld [vmem:[#allocation17 + $0x60] sm:$0xff] }
 0x33e   :  { %1332 = vmatmul.mubr.f32.vlgmr.msra.gmra.mxu0 %v2676_v2  ;;  %1409 = vmatmul.mubr.f32.vlgmr.msra.gmra.mxu1 %v2676_v2 }
 0x33f   :  { %1421 = vmatprep.subr.mxu0 %v1264_v0  ;;  %1498 = vmatprep.subr.mxu1 %v1266_v1  ;;  %v1153_v0 = vld [vmem:[#allocation17 + $0x70] sm:$0xff]  ;;  %v1144_v1 = vld [vmem:[#allocation17 + $0x28] sm:$0xff] }
 0x340   :  { %1422 = vmatpush1.msra.mxu0 %v1263_v3  ;;  %1499 = vmatpush1.msra.mxu1 %v1265_v4  ;;  %v1146_v3 = vld [vmem:[#allocation17 + $0x38] sm:$0xff]  ;;  %v1143_v4 = vld [vmem:[#allocation17 + $0x20] sm:$0xff] }
 0x341   :  { %1423 = vmatprep.subr.mxu0 %v1256_v6  ;;  %1500 = vmatprep.subr.mxu1 %v1258_v7  ;;  %v1145_v6 = vld [vmem:[#allocation17 + $0x30] sm:$0xff] }
 0x342   :  { %1337 = vmatprep.mubr.f32.mxu0 %v2513_v47  ;;  %1414 = vmatprep.mubr.f32.mxu1 %v2513_v47 }
 0x343   :  { %1424 = vmatpush1.msra.mxu0 %v1255_v8  ;;  %1501 = vmatpush1.msra.mxu1 %v1257_v9 }
 0x344   :  { %1338 = vmatmul.mubr.f32.gmra.mxu0 %v2673_v61  ;;  %1415 = vmatmul.mubr.f32.gmra.mxu1 %v2673_v61 }
 0x345   :  { %1425 = vmatprep.subr.mxu0 %v1248_v10  ;;  %1502 = vmatprep.subr.mxu1 %v1250_v11 }
 0x346   :  { %1426 = vmatpush1.msra.mxu0 %v1247_v12  ;;  %1503 = vmatpush1.msra.mxu1 %v1249_v13 }
 0x347   :  { %1427 = vmatprep.subr.mxu0 %v1240_v14  ;;  %1504 = vmatprep.subr.mxu1 %v1242_v15 }
 0x348   :  { %1428 = vmatpush1.msra.mxu0 %v1239_v16  ;;  %1505 = vmatpush1.msra.mxu1 %v1241_v17 }
 0x349   :  { %1429 = vmatprep.subr.mxu0 %v1232_v18  ;;  %1506 = vmatprep.subr.mxu1 %v1234_v19 }
 0x34a   :  { %1430 = vmatpush1.msra.mxu0 %v1231_v20  ;;  %1507 = vmatpush1.msra.mxu1 %v1233_v21 }
 0x34b   :  { %1431 = vmatprep.subr.mxu0 %v1224_v22  ;;  %1508 = vmatprep.subr.mxu1 %v1226_v23 }
 0x34c   :  { %1432 = vmatpush1.msra.mxu0 %v1223_v24  ;;  %1509 = vmatpush1.msra.mxu1 %v1225_v25 }
 0x34d   :  { %1433 = vmatprep.subr.mxu0 %v1216_v26  ;;  %1510 = vmatprep.subr.mxu1 %v1218_v27 }
 0x34e   :  { %1434 = vmatpush1.msra.mxu0 %v1215_v28  ;;  %1511 = vmatpush1.msra.mxu1 %v1217_v29 }
 0x34f   :  { %1435 = vmatprep.subr.mxu0 %v1208_v30  ;;  %1512 = vmatprep.subr.mxu1 %v1210_v31 }
 0x350   :  { %1436 = vmatpush1.msra.mxu0 %v1207_v32  ;;  %1513 = vmatpush1.msra.mxu1 %v1209_v33 }
 0x351   :  { %1437 = vmatprep.subr.mxu0 %v1200_v34  ;;  %1514 = vmatprep.subr.mxu1 %v1202_v35 }
 0x352   :  { %1438 = vmatpush1.msra.mxu0 %v1199_v36  ;;  %1515 = vmatpush1.msra.mxu1 %v1201_v37  ;;  %v1591_v37 = vld [vmem:[#allocation5] sm:$0x3] }
 0x353   :  { %1439 = vmatprep.subr.mxu0 %v1192_v38  ;;  %1516 = vmatprep.subr.mxu1 %v1194_v39 }
 0x354   :  { %1440 = vmatpush1.msra.mxu0 %v1191_v40  ;;  %1517 = vmatpush1.msra.mxu1 %v1193_v41 }
 0x355   :  { %1441 = vmatprep.subr.mxu0 %v1184_v42  ;;  %1518 = vmatprep.subr.mxu1 %v1186_v43 }
 0x356   :  { %1442 = vmatpush1.msra.mxu0 %v1183_v44  ;;  %1519 = vmatpush1.msra.mxu1 %v1185_v45 }
 0x357   :  { %1443 = vmatprep.subr.mxu0 %v1176_v46  ;;  %1520 = vmatprep.subr.mxu1 %v1178_v48 }
 0x358   :  { %1444 = vmatpush1.msra.mxu0 %v1175_v49  ;;  %1521 = vmatpush1.msra.mxu1 %v1177_v50 }
 0x359   :  { %1445 = vmatprep.subr.mxu0 %v1168_v51  ;;  %1522 = vmatprep.subr.mxu1 %v1170_v52 }
 0x35a   :  { %1446 = vmatpush1.msra.mxu0 %v1167_v53  ;;  %1523 = vmatpush1.msra.mxu1 %v1169_v54 }
 0x35b   :  { %1447 = vmatprep.subr.mxu0 %v1160_v55  ;;  %1524 = vmatprep.subr.mxu1 %v1162_v56 }
 0x35c   :  { %1448 = vmatpush1.msra.mxu0 %v1159_v57  ;;  %1525 = vmatpush1.msra.mxu1 %v1161_v58 }
 0x35d   :  { %1449 = vmatprep.subr.mxu0 %v1152_v59  ;;  %1526 = vmatprep.subr.mxu1 %v1154_v62 }
 0x35e   :  { %1450 = vmatpush1.msra.mxu0 %v1151_v63  ;;  %1527 = vmatpush1.msra.mxu1 %v1153_v0 }
 0x35f   :  { %1451 = vmatprep.subr.mxu0 %v1144_v1  ;;  %1528 = vmatprep.subr.mxu1 %v1146_v3 }
 0x360   :  { %1452 = vmatpush1.msra.mxu0 %v1143_v4  ;;  %1485 = vmatprep.mubr.f32.mxu0 %v2513_v47 }
 0x361   :  { %1529 = vmatpush1.msra.mxu1 %v1145_v6  ;;  %1562 = vmatprep.mubr.f32.mxu1 %v2513_v47 }
 0x362   :  { %1486 = vmatmul.mubr.f32.vlgmr.msra.gmra.mxu0 %v2676_v2  ;;  %1563 = vmatmul.mubr.f32.vlgmr.msra.gmra.mxu1 %v2676_v2 }
 0x363   :  { %1491 = vmatprep.mubr.f32.mxu0 %v2513_v47  ;;  %1568 = vmatprep.mubr.f32.mxu1 %v2513_v47 }
 0x366   :  { %1492 = vmatmul.mubr.f32.gmra.mxu0 %v2673_v61  ;;  %1569 = vmatmul.mubr.f32.gmra.mxu1 %v2673_v61 }
 0x367   :  { %1660 = vmatprep.mubr.f32.mxu0 %v2513_v47  ;;  %1731 = vmatprep.mubr.f32.mxu1 %v2513_v47 }
 0x3b7   :  { %v897_v7 = vpop.f32.mrf.mxu0  ;;  %v974_v8 = vpop.f32.mrf.mxu1 }
 0x3b9   :  { %v899_v9 = vpop.f32.mrf.mxu0  ;;  %v976_v10 = vpop.f32.mrf.mxu1 }
 0x3bd   :  { %v903_v11 = vpop.f32.mrf.mxu0  ;;  %v980_v12 = vpop.f32.mrf.mxu1 }
 0x3bf   :  { %v905_v13 = vpop.f32.mrf.mxu0  ;;  %v982_v2 = vpop.f32.mrf.mxu1 }
 0x3da   :  { %v1051_v14 = vpop.f32.mrf.mxu0  ;;  %v1128_v15 = vpop.f32.mrf.mxu1 }
 0x3dc   :  { %v1053_v16 = vpop.f32.mrf.mxu0  ;;  %v1130_v17 = vpop.f32.mrf.mxu1 }
 0x3e0   :  { %v1057_v18 = vpop.f32.mrf.mxu0  ;;  %v1134_v19 = vpop.f32.mrf.mxu1 }
 0x3e2   :  { %v1059_v20 = vpop.f32.mrf.mxu0  ;;  %v1136_v61 = vpop.f32.mrf.mxu1 }
 0x3fe   :  { %v1333_v21 = vpop.f32.mrf.mxu0  ;;  %v1410_v22 = vpop.f32.mrf.mxu1 }
 0x3ff   :  { %v1575_v35 = vmul.f32 %v1333_v21, %v897_v7  ;;  %v1577_v36 = vmul.f32 %v1410_v22, %v974_v8 }
 0x400   :  { %v1335_v23 = vpop.f32.mrf.mxu0  ;;  %v1412_v24 = vpop.f32.mrf.mxu1 }
 0x401   :  { %v1576_v33 = vmul.f32 %v1335_v23, %v899_v9  ;;  %v1578_v34 = vmul.f32 %v1412_v24, %v976_v10 }
 0x404   :  { %v1339_v25 = vpop.f32.mrf.mxu0  ;;  %v1416_v26 = vpop.f32.mrf.mxu1 }
 0x405   :  { %v1583_v31 = vmul.f32 %v1339_v25, %v903_v11  ;;  %v1585_v32 = vmul.f32 %v1416_v26, %v980_v12 }
 0x406   :  { %v1341_v27 = vpop.f32.mrf.mxu0  ;;  %v1418_v28 = vpop.f32.mrf.mxu1 }
 0x407   :  { %v1584_v29 = vmul.f32 %v1341_v27, %v905_v13  ;;  %v1586_v30 = vmul.f32 %v1418_v28, %v982_v2 }
 0x409   :  { %1624 = vmatprep.subr.mxu0 %v1584_v29  ;;  %1695 = vmatprep.subr.mxu1 %v1586_v30 }
 0x40a   :  { %1625 = vmatpush1.msra.mxu0 %v1583_v31  ;;  %1696 = vmatpush1.msra.mxu1 %v1585_v32 }
 0x40b   :  { %1626 = vmatprep.subr.mxu0 %v1576_v33  ;;  %1697 = vmatprep.subr.mxu1 %v1578_v34 }
 0x40c   :  { %1627 = vmatpush1.msra.mxu0 %v1575_v35  ;;  %1698 = vmatpush1.msra.mxu1 %v1577_v36 }
 0x40d   :  { %2074 = vmatmul.mubr.msk.f32.vlgmr.msra.gmra.mxu0 %vm1592_vm1, %v1591_v37  ;;  %2075 = vmatmul.mubr.msk.f32.vlgmr.msra.gmra.mxu1 %vm1592_vm1, %v1591_v37 }
 0x40e   :  { %1802 = vmatprep.mubr.f32.mxu0 %v2513_v47  ;;  %1873 = vmatprep.mubr.f32.mxu1 %v2513_v47 }
 0x422   :  { %v1487_v38 = vpop.f32.mrf.mxu0  ;;  %v1564_v39 = vpop.f32.mrf.mxu1 }
 0x423   :  { %v1579_v53 = vmul.f32 %v1487_v38, %v1051_v14  ;;  %v1581_v54 = vmul.f32 %v1564_v39, %v1128_v15 }
 0x424   :  { %v1489_v40 = vpop.f32.mrf.mxu0  ;;  %v1566_v41 = vpop.f32.mrf.mxu1 }
 0x425   :  { %v1580_v51 = vmul.f32 %v1489_v40, %v1053_v16  ;;  %v1582_v52 = vmul.f32 %v1566_v41, %v1130_v17 }
 0x426   :  { %v1493_v42 = vpop.f32.mrf.mxu0  ;;  %v1570_v43 = vpop.f32.mrf.mxu1 }
 0x427   :  { %v1587_v49 = vmul.f32 %v1493_v42, %v1057_v18  ;;  %v1589_v50 = vmul.f32 %v1570_v43, %v1134_v19 }
 0x428   :  { %v1495_v44 = vpop.f32.mrf.mxu0  ;;  %v1572_v45 = vpop.f32.mrf.mxu1 }
 0x429   :  { %v1588_v46 = vmul.f32 %v1495_v44, %v1059_v20  ;;  %v1590_v48 = vmul.f32 %v1572_v45, %v1136_v61 }
 0x42b   :  { %1766 = vmatprep.subr.mxu0 %v1588_v46  ;;  %1837 = vmatprep.subr.mxu1 %v1590_v48 }
 0x42c   :  { %1767 = vmatpush1.msra.mxu0 %v1587_v49  ;;  %1838 = vmatpush1.msra.mxu1 %v1589_v50 }
 0x42d   :  { %1768 = vmatprep.subr.mxu0 %v1580_v51  ;;  %1839 = vmatprep.subr.mxu1 %v1582_v52 }
 0x42e   :  { %1769 = vmatpush1.msra.mxu0 %v1579_v53  ;;  %1840 = vmatpush1.msra.mxu1 %v1581_v54 }
 0x42f   :  { %2076 = vmatmul.mubr.msk.f32.vlgmr.msra.gmra.mxu0 %vm1592_vm1, %v1591_v37  ;;  %2077 = vmatmul.mubr.msk.f32.vlgmr.msra.gmra.mxu1 %vm1592_vm1, %v1591_v37 }
 0x430   :  { %2184 = vmatprep.subr.mxu0 %v2513_v47  ;;  %2188 = vmatprep.mubr.msk.f32.mxu0 %vm2514_vm2, %v2513_v47 }
 0x431   :  { %2185 = vmatpush3.msra.mxu0 %v2661_v5 }
 0x432   :  { %2186 = vmatprep.subr.mxu0 %v2513_v47 }
 0x433   :  { %2187 = vmatpush3.msra.mxu0 %v2655_v60 }
 0x434   :  { %2189 = vmatmul.mubr.msk.f32.vlgmr.msra.gmra.mxu0 %vm1592_vm1, %v1591_v37 }
 0x435   :  { %2434 = shalt.err (!%p2431_p12)
}
 0x436   :  { %2023 = dma.vmem_to_hbm [thread:$0]  %s2018_s20, 256, %s2730_s11, [#allocation4], %s2502_s18, %s2502_s18, %s2503_s19   ;;  %v2516_v47 = vmov 1983009808   ;;  %v1974_v5 = vlaneseq  ;;  %v1954_v6 = vld [vmem:[#allocation7] sm:$0xff]  ;;  %v1955_v18 = vld [vmem:[#allocation7 + $0x8] sm:$0xff] }
 0x437   :  { %v1972_v60 = vunpack.c.l.s4 %v2516_v47  ;;  %v2009_v14 = vld [vmem:[#allocation22] sm:$0x3]  ;;  %s2517_s11 = smov [#allocation20]   ;;  %s2518_s19 = smov [#allocation22]  }
 0x438   :  { %v1975_v56 = vshrl.u32 %v1974_v5, 7  ;;  %s2030_s18 = sshll.u32 %s2517_s11, 4  ;;  %s2040_s0 = sshll.u32 %s2518_s19, 4  ;;  %s2031_s18 = int_to_ptr.vmem [resolvable:$true] %s2030_s18  ;;  %s2041_s0 = int_to_ptr.vmem [resolvable:$true] %s2040_s0 }
 0x439   :  { %v1973_v55 = vunpack.c.0.s8 %v1972_v60  ;;  %s2443_s23 = scalar_lea.vmem %s2031_s18, 256  ;;  %p2448_p0 = scmp.lt.s32.totalorder %s2031_s18, %s2031_s18 }
 0x43a   :  { %p2444_p13 = scmp.ne.s32.totalorder %s2031_s18, %s2443_s23  ;;  %p2449_p1 = scmp.lt.s32.totalorder %s2443_s23, %s2443_s23 }
 0x43b   :  { %v1976_v59 = vsub.s32 %v1973_v55, %v1975_v56 }
 0x43c   :  { %p2450_p2 = por %p2449_p1, %p2448_p0 }
 0x43e   :  { %p2451_p3 = pnand %p2450_p2, %p2444_p13 }
 0x4cd   :  { %v1662_v57 = vpop.f32.mrf.mxu0  ;;  %v1733_v58 = vpop.f32.mrf.mxu1 }
 0x4cf   :  { %v1664_v62 = vpop.f32.mrf.mxu0  ;;  %v1735_v63 = vpop.f32.mrf.mxu1 }
 0x4d0   :  { %v1969_v0 = vcombine.low %v1662_v57, %v1664_v62  ;;  %v1970_v1 = vcombine.low %v1733_v58, %v1735_v63 }
 0x4d2   :  { %v1977_v3 = vrot.slane %v1969_v0, %v1976_v59  ;;  %v1984_v4 = vrot.slane %v1970_v1, %v1976_v59 }
 0x4d4   :  { %v1985_v7 = vcombine.low %v1977_v3, %v1984_v4 }
 0x4d6   :  { %v2005_v8 = vadd.f32 %v1985_v7, %v1954_v6 }
 0x4d8   :  { %2007 = vst [vmem:[#allocation20] sm:$0xff] %v2005_v8 }
 0x4ef   :  { %v1804_v9 = vpop.f32.mrf.mxu0  ;;  %v1875_v10 = vpop.f32.mrf.mxu1 }
 0x4f1   :  { %v1806_v11 = vpop.f32.mrf.mxu0  ;;  %v1877_v12 = vpop.f32.mrf.mxu1 }
 0x4f2   :  { %v1986_v13 = vcombine.low %v1804_v9, %v1806_v11  ;;  %v1987_v2 = vcombine.low %v1875_v10, %v1877_v12 }
 0x4f4   :  { %v1994_v15 = vrot.slane %v1986_v13, %v1976_v59  ;;  %v2001_v16 = vrot.slane %v1987_v2, %v1976_v59  ;;  %v1946_v17 = vpop.f32.mrf.mxu0 }
 0x4f5   :  { %v2010_v19 = vadd.f32 %v2009_v14, %v1946_v17 }
 0x4f6   :  { %v2002_v20 = vcombine.low %v1994_v15, %v2001_v16  ;;  %v2190_v61 = vpop.f32.mrf.mxu0 }
 0x4f7   :  { %2011 = vst [vmem:[#allocation22] sm:$0x3] %v2010_v19 }
 0x4f8   :  { %v2006_v21 = vadd.f32 %v2002_v20, %v1955_v18 }
 0x4fa   :  { %2008 = vst [vmem:[#allocation20 + $0x8] sm:$0xff] %v2006_v21 }
 0x4fb   :  { %2454 = shalt.err (!%p2451_p3)
}
 0x4fc   :  { %2033 = dma.vmem_to_hbm [thread:$0]  %s2031_s18, 256, %s2731_s12, [#allocation21]  }
 0x4fd   :  { %s2463_s26 = scalar_lea.vmem %s2041_s0, 32  ;;  %p2468_p5 = scmp.lt.s32.totalorder %s2041_s0, %s2041_s0 }
 0x4fe   :  { %p2464_p4 = scmp.ne.s32.totalorder %s2041_s0, %s2463_s26  ;;  %p2469_p6 = scmp.lt.s32.totalorder %s2463_s26, %s2463_s26 }
 0x500   :  { %p2470_p7 = por %p2469_p6, %p2468_p5 }
 0x502   :  { %p2471_p8 = pnand %p2470_p7, %p2464_p4 }
 0x504   :  { %2474 = shalt.err (!%p2471_p8)
}
 0x505   :  { %2043 = dma.vmem_to_hbm [thread:$0]  %s2041_s0, 32, %s2732_s13, [#allocation21]  }
 0x506   :  { %2495 = dma.done.wait [#allocation4], 256  }
 0x507   :  { %2496 = vsyncadd [#allocation4], 4294967040 }
 0x508   :  { %2497 = dma.done.wait [#allocation21], 288  }
 0x509   :  { %2498 = vsyncadd [#allocation21], 4294967008 }
 0x50a   :  { %2053 = vsyncpa [#allocation3], 1 }
 0x50b   :  { %2054 = vsyncpa [#allocation6], 1 }
 0x50c   :  { %2055 = vsyncpa [#allocation9], 1 }
 0x50d   :  { %2056 = vsyncpa [#allocation12], 1 }
 0x50e   :  { %2057 = vsyncpa [#allocation15], 1 }
 0x50f   :  { %2058 = vsyncpa [#allocation18], 1 }
 0x510   :  { %2059 = vsyncpa [#allocation4], 1 }
 0x511   :  { %2060 = vsyncpa [#allocation21], 1 }

</bundles_post_ra>
